<compile_context>
chip_gen: v7x
topology: tpu7x:2x2x1
jax: 0.10.0
libtpu: 0.0.40
codegen_flags: <defaults>
</compile_context>

<pallas_src>
import jax
import jax.numpy as jnp
import numpy as np
from jax.experimental import pallas as pl
from jax.experimental.pallas import tpu as pltpu


def _round_up(x, m):
    return -(-x // m) * m


def _sigmoid(x):
    # Logistic via tanh: a single EUP transcendental plus cheap VPU mul/add,
    # instead of exp + divide (extra EUP/VPU round-trip on the serial chain).
    return 0.5 * (jnp.tanh(0.5 * x) + 1.0)


def _make_kernel(T, D, Hp, proj_off):
    """Builds the kernel with the static unroll length / layout baked in."""

    def kernel(z_ref, wl_ref, bl_ref, wf_ref, bf_ref, wo_ref, bo_ref, out_ref):
        # z_ref  : (Bp, L)        padded latent
        # wl_ref : (L, Hp)        latent_to_hidden weight (cols padded to Hp)
        # bl_ref : (1, Hp)
        # wf_ref : (Hp, Wtot)     fused [W_hh per-gate 128-lane slots, W_out
        #                          embedded at proj_off inside the o-slot pad]
        # bf_ref : (1, Wtot)      fused [b_ih + b_hh, b_out at proj_off]
        # wo_ref : (Hp, D)        slim projection weight for the final step
        # bo_ref : (1, D)
        # out_ref: (Bp, T*D)      lane-dense output, out[:, t*D:(t+1)*D] = y_t
        Bp = out_ref.shape[0]
        Wtot = wf_ref.shape[1]

        # latent_to_hidden; padded lanes of wl/bl are zero -> padded h lanes 0.
        h = jnp.dot(z_ref[...], wl_ref[...],
                    preferred_element_type=jnp.float32) + bl_ref[...]
        c = jnp.zeros_like(h)

        wf = wf_ref[...]
        # Hoisted: one broadcast reused by every unrolled step (JAX does not
        # CSE broadcast_in_dim).
        bias = jnp.broadcast_to(bf_ref[...], (Bp, Wtot))

        # Statically unrolled recurrence: T fused MXU dots total.
        for t in range(T):
            # One fused pass of exactly 4*Hp lanes: gate k (i,f,g,o) occupies
            # lanes [k*Hp, k*Hp+H); proj(h_t) = y_{t-1} lives in the o-slot's
            # zero-weight padding lanes [proj_off, proj_off+D).
            fused = jnp.dot(h, wf, preferred_element_type=jnp.float32) + bias
            if t > 0:
                # Per-step store: bounds live vregs and lets the lane
                # relayout hide under the next step's MXU work.
                out_ref[:, (t - 1) * D:t * D] = fused[:, proj_off:proj_off + D]
            # Each gate is a full 128-lane vreg slice -> whole-vreg EUP calls.
            i_g = _sigmoid(fused[:, 0 * Hp:1 * Hp])
            f_g = _sigmoid(fused[:, 1 * Hp:2 * Hp])
            g_g = jnp.tanh(fused[:, 2 * Hp:3 * Hp])
            o_g = _sigmoid(fused[:, 3 * Hp:4 * Hp])
            c = f_g * c + i_g * g_g
            h = o_g * jnp.tanh(c)

        # Final step only needs the projection of h_T: one slim
        # (Bp,Hp)@(Hp,D) dot instead of the full 4*Hp-wide fused RHS.
        y_last = jnp.dot(h, wo_ref[...],
                         preferred_element_type=jnp.float32) + bo_ref[...]
        out_ref[:, (T - 1) * D:T * D] = y_last

    return kernel


def lstm_decoder_pallas(z, params, seq_len):
    """z: (B, latent_dim). Returns (B, seq_len, output_dim) float32."""
    B, L = z.shape
    H = params["W_hh"].shape[0]
    D = params["W_out"].shape[1]
    T = int(seq_len)

    Bp = _round_up(B, 8)      # sublane tile
    Hp = _round_up(H, 128)    # one full 128-lane slot per gate

    f32 = jnp.float32
    z_p = jnp.zeros((Bp, L), f32).at[:B].set(z.astype(f32))

    wl_p = jnp.zeros((L, Hp), f32).at[:, :H].set(params["W_l2h"])
    bl_p = jnp.zeros((1, Hp), f32).at[:, :H].set(params["b_l2h"])

    # Fused recurrent weight/bias: gate k (torch order i,f,g,o) lives in lanes
    # [k*Hp, k*Hp+H).  W_out/b_out are embedded inside the o-slot's zero
    # padding when they fit (keeps the fused width at exactly 4*Hp = 4 MXU
    # column tiles on v5e / 2 on v6e+v7x); otherwise an appended 128-aligned
    # slot is used.  Padded weight rows/lanes are zero, so padded h/c lanes
    # never leak into real lanes.
    if D <= Hp - H:
        Wtot = 4 * Hp
        proj_off = 3 * Hp + H
    else:
        Wtot = 4 * Hp + _round_up(D, 128)
        proj_off = 4 * Hp

    W_hh, bias_g = params["W_hh"], params["bias_g"]
    wf = jnp.zeros((Hp, Wtot), f32)
    bf = jnp.zeros((1, Wtot), f32)
    for k in range(4):
        wf = wf.at[:H, k * Hp:k * Hp + H].set(W_hh[:, k * H:(k + 1) * H])
        bf = bf.at[:, k * Hp:k * Hp + H].set(bias_g[:, k * H:(k + 1) * H])
    wf = wf.at[:H, proj_off:proj_off + D].set(params["W_out"])
    bf = bf.at[:, proj_off:proj_off + D].set(params["b_out"])

    # Slim projection weight/bias for the final, projection-only pass.
    wo_p = jnp.zeros((Hp, D), f32).at[:H].set(params["W_out"])
    bo_p = params["b_out"].astype(f32)

    vmem = pl.BlockSpec(memory_space=pltpu.MemorySpace.VMEM)
    out_flat = pl.pallas_call(
        _make_kernel(T, D, Hp, proj_off),
        out_shape=jax.ShapeDtypeStruct((Bp, T * D), f32),
        in_specs=[vmem] * 7,
        out_specs=vmem,
    )(z_p, wl_p, bl_p, wf, bf, wo_p, bo_p)

    # Lane-dense (Bp, T*D) -> PyTorch batch_first (B, T, D): slice + reshape,
    # no transpose needed.
    return out_flat[:B].reshape(B, T, D)


def lstm_decoder_ref(z, params, seq_len):
    """Pure-JAX reference implementing the PyTorch semantics."""
    H = params["W_hh"].shape[0]
    h = z @ params["W_l2h"] + params["b_l2h"]
    c = jnp.zeros_like(h)
    ys = []
    for _ in range(seq_len):
        gates = h @ params["W_hh"] + params["bias_g"]
        i_g = jax.nn.sigmoid(gates[:, 0 * H:1 * H])
        f_g = jax.nn.sigmoid(gates[:, 1 * H:2 * H])
        g_g = jnp.tanh(gates[:, 2 * H:3 * H])
        o_g = jax.nn.sigmoid(gates[:, 3 * H:4 * H])
        c = f_g * c + i_g * g_g
        h = o_g * jnp.tanh(c)
        ys.append(h @ params["W_out"] + params["b_out"])
    return jnp.stack(ys, axis=1)


def make_params(key, latent_dim, hidden_dim, output_dim):
    ks = jax.random.split(key, 8)
    s = 0.1
    # PyTorch stores weights as (out, in); we keep the (in, out) transpose so
    # the kernel does row-major x @ W.  Gate order i, f, g, o as in torch.nn.LSTM.
    W_l2h = s * jax.random.normal(ks[0], (latent_dim, hidden_dim), jnp.float32)
    b_l2h = s * jax.random.normal(ks[1], (1, hidden_dim), jnp.float32)
    W_hh = s * jax.random.normal(ks[2], (hidden_dim, 4 * hidden_dim), jnp.float32)
    b_ih = s * jax.random.normal(ks[3], (1, 4 * hidden_dim), jnp.float32)
    b_hh = s * jax.random.normal(ks[4], (1, 4 * hidden_dim), jnp.float32)
    W_out = s * jax.random.normal(ks[5], (hidden_dim, output_dim), jnp.float32)
    b_out = s * jax.random.normal(ks[6], (1, output_dim), jnp.float32)
    # The LSTM input is all zeros, so W_ih never contributes; only its bias
    # does -> fold the two biases together.  (Assumption is specific to this
    # module's forward, which always feeds a zero input tensor.)
    return {
        "W_l2h": W_l2h, "b_l2h": b_l2h,
        "W_hh": W_hh, "bias_g": b_ih + b_hh,
        "W_out": W_out, "b_out": b_out,
    }


if __name__ == "__main__":
    latent_dim, hidden_dim, output_dim = 8, 32, 16
    batch, seq_len = 2, 8

    key = jax.random.PRNGKey(0)
    kz, kp = jax.random.split(key)
    z = jax.random.normal(kz, (batch, latent_dim), jnp.float32)
    params = make_params(kp, latent_dim, hidden_dim, output_dim)

    out = lstm_decoder_pallas(z, params, seq_len)
    out = jax.block_until_ready(out)

    ref = lstm_decoder_ref(z, params, seq_len)
    assert out.shape == (batch, seq_len, output_dim)
    np.testing.assert_allclose(np.asarray(out), np.asarray(ref), rtol=1e-5, atol=1e-5)

    print("KERNEL_OK")
</pallas_src>

<mosaic_0001>
module attributes {stable_mosaic.version = 11 : i64} {
  func.func @kernel(%arg0: memref<8x8xf32, #tpu.memory_space<vmem>>, %arg1: memref<8x128xf32, #tpu.memory_space<vmem>>, %arg2: memref<1x128xf32, #tpu.memory_space<vmem>>, %arg3: memref<128x512xf32, #tpu.memory_space<vmem>>, %arg4: memref<1x512xf32, #tpu.memory_space<vmem>>, %arg5: memref<128x16xf32, #tpu.memory_space<vmem>>, %arg6: memref<1x16xf32, #tpu.memory_space<vmem>>, %arg7: memref<8x128xf32, #tpu.memory_space<vmem>>) attributes {dimension_semantics = [], scalar_prefetch = 0 : i64, scratch_operands = 0 : i64, tpu.core_type = #tpu.core_type<tc>} {
    %c0 = arith.constant 0 : index
    %c0_0 = arith.constant 0 : index
    %0 = vector.load %arg0[%c0, %c0_0] : memref<8x8xf32, #tpu.memory_space<vmem>>, vector<8x8xf32>
    %c0_1 = arith.constant 0 : index
    %c0_2 = arith.constant 0 : index
    %1 = vector.load %arg1[%c0_1, %c0_2] : memref<8x128xf32, #tpu.memory_space<vmem>>, vector<8x128xf32>
    %cst = arith.constant dense<0.000000e+00> : vector<8x128xf32>
    %2 = tpu.matmul %0, %1, %cst {dimension_numbers = #tpu.dot_dimension_numbers<[1], [0], [0], [1], [0, 0, 1, 1], [], []>} : vector<8x8xf32>, vector<8x128xf32>, vector<8x128xf32> -> vector<8x128xf32>
    %c0_3 = arith.constant 0 : index
    %c0_4 = arith.constant 0 : index
    %3 = vector.load %arg2[%c0_3, %c0_4] : memref<1x128xf32, #tpu.memory_space<vmem>>, vector<1x128xf32>
    %4 = vector.broadcast %3 : vector<1x128xf32> to vector<8x128xf32>
    %5 = arith.addf %2, %4 : vector<8x128xf32>
    %cst_5 = arith.constant 0.000000e+00 : f32
    %6 = vector.broadcast %cst_5 : f32 to vector<8x128xf32>
    %c0_6 = arith.constant 0 : index
    %c0_7 = arith.constant 0 : index
    %7 = vector.load %arg3[%c0_6, %c0_7] : memref<128x512xf32, #tpu.memory_space<vmem>>, vector<128x512xf32>
    %c0_8 = arith.constant 0 : index
    %c0_9 = arith.constant 0 : index
    %8 = vector.load %arg4[%c0_8, %c0_9] : memref<1x512xf32, #tpu.memory_space<vmem>>, vector<1x512xf32>
    %9 = vector.shape_cast %8 : vector<1x512xf32> to vector<1x512xf32>
    %10 = vector.broadcast %9 : vector<1x512xf32> to vector<8x512xf32>
    %cst_10 = arith.constant dense<0.000000e+00> : vector<8x512xf32>
    %11 = tpu.matmul %5, %7, %cst_10 {dimension_numbers = #tpu.dot_dimension_numbers<[1], [0], [0], [1], [0, 0, 1, 1], [], []>} : vector<8x128xf32>, vector<128x512xf32>, vector<8x512xf32> -> vector<8x512xf32>
    %12 = arith.addf %11, %10 : vector<8x512xf32>
    %13 = vector.extract_strided_slice %12 {offsets = [0, 0], sizes = [8, 128], strides = [1, 1]} : vector<8x512xf32> to vector<8x128xf32>
    %cst_11 = arith.constant 5.000000e-01 : f32
    %14 = vector.broadcast %cst_11 : f32 to vector<8x128xf32>
    %15 = arith.mulf %14, %13 : vector<8x128xf32>
    %16 = math.tanh %15 : vector<8x128xf32>
    %cst_12 = arith.constant 1.000000e+00 : f32
    %17 = vector.broadcast %cst_12 : f32 to vector<8x128xf32>
    %18 = arith.addf %16, %17 : vector<8x128xf32>
    %cst_13 = arith.constant 5.000000e-01 : f32
    %19 = vector.broadcast %cst_13 : f32 to vector<8x128xf32>
    %20 = arith.mulf %19, %18 : vector<8x128xf32>
    %21 = vector.extract_strided_slice %12 {offsets = [0, 128], sizes = [8, 128], strides = [1, 1]} : vector<8x512xf32> to vector<8x128xf32>
    %cst_14 = arith.constant 5.000000e-01 : f32
    %22 = vector.broadcast %cst_14 : f32 to vector<8x128xf32>
    %23 = arith.mulf %22, %21 : vector<8x128xf32>
    %24 = math.tanh %23 : vector<8x128xf32>
    %cst_15 = arith.constant 1.000000e+00 : f32
    %25 = vector.broadcast %cst_15 : f32 to vector<8x128xf32>
    %26 = arith.addf %24, %25 : vector<8x128xf32>
    %cst_16 = arith.constant 5.000000e-01 : f32
    %27 = vector.broadcast %cst_16 : f32 to vector<8x128xf32>
    %28 = arith.mulf %27, %26 : vector<8x128xf32>
    %29 = vector.extract_strided_slice %12 {offsets = [0, 256], sizes = [8, 128], strides = [1, 1]} : vector<8x512xf32> to vector<8x128xf32>
    %30 = math.tanh %29 : vector<8x128xf32>
    %31 = vector.extract_strided_slice %12 {offsets = [0, 384], sizes = [8, 128], strides = [1, 1]} : vector<8x512xf32> to vector<8x128xf32>
    %cst_17 = arith.constant 5.000000e-01 : f32
    %32 = vector.broadcast %cst_17 : f32 to vector<8x128xf32>
    %33 = arith.mulf %32, %31 : vector<8x128xf32>
    %34 = math.tanh %33 : vector<8x128xf32>
    %cst_18 = arith.constant 1.000000e+00 : f32
    %35 = vector.broadcast %cst_18 : f32 to vector<8x128xf32>
    %36 = arith.addf %34, %35 : vector<8x128xf32>
    %cst_19 = arith.constant 5.000000e-01 : f32
    %37 = vector.broadcast %cst_19 : f32 to vector<8x128xf32>
    %38 = arith.mulf %37, %36 : vector<8x128xf32>
    %39 = arith.mulf %28, %6 : vector<8x128xf32>
    %40 = arith.mulf %20, %30 : vector<8x128xf32>
    %41 = arith.addf %39, %40 : vector<8x128xf32>
    %42 = math.tanh %41 : vector<8x128xf32>
    %43 = arith.mulf %38, %42 : vector<8x128xf32>
    %cst_20 = arith.constant dense<0.000000e+00> : vector<8x512xf32>
    %44 = tpu.matmul %43, %7, %cst_20 {dimension_numbers = #tpu.dot_dimension_numbers<[1], [0], [0], [1], [0, 0, 1, 1], [], []>} : vector<8x128xf32>, vector<128x512xf32>, vector<8x512xf32> -> vector<8x512xf32>
    %45 = arith.addf %44, %10 : vector<8x512xf32>
    %46 = vector.extract_strided_slice %45 {offsets = [0, 416], sizes = [8, 16], strides = [1, 1]} : vector<8x512xf32> to vector<8x16xf32>
    %c0_21 = arith.constant 0 : index
    %c0_22 = arith.constant 0 : index
    %47 = vector.load %arg7[%c0_21, %c0_22] : memref<8x128xf32, #tpu.memory_space<vmem>>, vector<8x16xf32>
    tpu.vector_store %arg7[%c0_21, %c0_22], %46 {strides = array<i32>} : memref<8x128xf32, #tpu.memory_space<vmem>>, vector<8x16xf32>,
    %48 = vector.extract_strided_slice %45 {offsets = [0, 0], sizes = [8, 128], strides = [1, 1]} : vector<8x512xf32> to vector<8x128xf32>
    %cst_23 = arith.constant 5.000000e-01 : f32
    %49 = vector.broadcast %cst_23 : f32 to vector<8x128xf32>
    %50 = arith.mulf %49, %48 : vector<8x128xf32>
    %51 = math.tanh %50 : vector<8x128xf32>
    %cst_24 = arith.constant 1.000000e+00 : f32
    %52 = vector.broadcast %cst_24 : f32 to vector<8x128xf32>
    %53 = arith.addf %51, %52 : vector<8x128xf32>
    %cst_25 = arith.constant 5.000000e-01 : f32
    %54 = vector.broadcast %cst_25 : f32 to vector<8x128xf32>
    %55 = arith.mulf %54, %53 : vector<8x128xf32>
    %56 = vector.extract_strided_slice %45 {offsets = [0, 128], sizes = [8, 128], strides = [1, 1]} : vector<8x512xf32> to vector<8x128xf32>
    %cst_26 = arith.constant 5.000000e-01 : f32
    %57 = vector.broadcast %cst_26 : f32 to vector<8x128xf32>
    %58 = arith.mulf %57, %56 : vector<8x128xf32>
    %59 = math.tanh %58 : vector<8x128xf32>
    %cst_27 = arith.constant 1.000000e+00 : f32
    %60 = vector.broadcast %cst_27 : f32 to vector<8x128xf32>
    %61 = arith.addf %59, %60 : vector<8x128xf32>
    %cst_28 = arith.constant 5.000000e-01 : f32
    %62 = vector.broadcast %cst_28 : f32 to vector<8x128xf32>
    %63 = arith.mulf %62, %61 : vector<8x128xf32>
    %64 = vector.extract_strided_slice %45 {offsets = [0, 256], sizes = [8, 128], strides = [1, 1]} : vector<8x512xf32> to vector<8x128xf32>
    %65 = math.tanh %64 : vector<8x128xf32>
    %66 = vector.extract_strided_slice %45 {offsets = [0, 384], sizes = [8, 128], strides = [1, 1]} : vector<8x512xf32> to vector<8x128xf32>
    %cst_29 = arith.constant 5.000000e-01 : f32
    %67 = vector.broadcast %cst_29 : f32 to vector<8x128xf32>
    %68 = arith.mulf %67, %66 : vector<8x128xf32>
    %69 = math.tanh %68 : vector<8x128xf32>
    %cst_30 = arith.constant 1.000000e+00 : f32
    %70 = vector.broadcast %cst_30 : f32 to vector<8x128xf32>
    %71 = arith.addf %69, %70 : vector<8x128xf32>
    %cst_31 = arith.constant 5.000000e-01 : f32
    %72 = vector.broadcast %cst_31 : f32 to vector<8x128xf32>
    %73 = arith.mulf %72, %71 : vector<8x128xf32>
    %74 = arith.mulf %63, %41 : vector<8x128xf32>
    %75 = arith.mulf %55, %65 : vector<8x128xf32>
    %76 = arith.addf %74, %75 : vector<8x128xf32>
    %77 = math.tanh %76 : vector<8x128xf32>
    %78 = arith.mulf %73, %77 : vector<8x128xf32>
    %cst_32 = arith.constant dense<0.000000e+00> : vector<8x512xf32>
    %79 = tpu.matmul %78, %7, %cst_32 {dimension_numbers = #tpu.dot_dimension_numbers<[1], [0], [0], [1], [0, 0, 1, 1], [], []>} : vector<8x128xf32>, vector<128x512xf32>, vector<8x512xf32> -> vector<8x512xf32>
    %80 = arith.addf %79, %10 : vector<8x512xf32>
    %81 = vector.extract_strided_slice %80 {offsets = [0, 416], sizes = [8, 16], strides = [1, 1]} : vector<8x512xf32> to vector<8x16xf32>
    %c0_33 = arith.constant 0 : index
    %c16 = arith.constant 16 : index
    %82 = vector.load %arg7[%c0_33, %c16] : memref<8x128xf32, #tpu.memory_space<vmem>>, vector<8x16xf32>
    tpu.vector_store %arg7[%c0_33, %c16], %81 {strides = array<i32>} : memref<8x128xf32, #tpu.memory_space<vmem>>, vector<8x16xf32>,
    %83 = vector.extract_strided_slice %80 {offsets = [0, 0], sizes = [8, 128], strides = [1, 1]} : vector<8x512xf32> to vector<8x128xf32>
    %cst_34 = arith.constant 5.000000e-01 : f32
    %84 = vector.broadcast %cst_34 : f32 to vector<8x128xf32>
    %85 = arith.mulf %84, %83 : vector<8x128xf32>
    %86 = math.tanh %85 : vector<8x128xf32>
    %cst_35 = arith.constant 1.000000e+00 : f32
    %87 = vector.broadcast %cst_35 : f32 to vector<8x128xf32>
    %88 = arith.addf %86, %87 : vector<8x128xf32>
    %cst_36 = arith.constant 5.000000e-01 : f32
    %89 = vector.broadcast %cst_36 : f32 to vector<8x128xf32>
    %90 = arith.mulf %89, %88 : vector<8x128xf32>
    %91 = vector.extract_strided_slice %80 {offsets = [0, 128], sizes = [8, 128], strides = [1, 1]} : vector<8x512xf32> to vector<8x128xf32>
    %cst_37 = arith.constant 5.000000e-01 : f32
    %92 = vector.broadcast %cst_37 : f32 to vector<8x128xf32>
    %93 = arith.mulf %92, %91 : vector<8x128xf32>
    %94 = math.tanh %93 : vector<8x128xf32>
    %cst_38 = arith.constant 1.000000e+00 : f32
    %95 = vector.broadcast %cst_38 : f32 to vector<8x128xf32>
    %96 = arith.addf %94, %95 : vector<8x128xf32>
    %cst_39 = arith.constant 5.000000e-01 : f32
    %97 = vector.broadcast %cst_39 : f32 to vector<8x128xf32>
    %98 = arith.mulf %97, %96 : vector<8x128xf32>
    %99 = vector.extract_strided_slice %80 {offsets = [0, 256], sizes = [8, 128], strides = [1, 1]} : vector<8x512xf32> to vector<8x128xf32>
    %100 = math.tanh %99 : vector<8x128xf32>
    %101 = vector.extract_strided_slice %80 {offsets = [0, 384], sizes = [8, 128], strides = [1, 1]} : vector<8x512xf32> to vector<8x128xf32>
    %cst_40 = arith.constant 5.000000e-01 : f32
    %102 = vector.broadcast %cst_40 : f32 to vector<8x128xf32>
    %103 = arith.mulf %102, %101 : vector<8x128xf32>
    %104 = math.tanh %103 : vector<8x128xf32>
    %cst_41 = arith.constant 1.000000e+00 : f32
    %105 = vector.broadcast %cst_41 : f32 to vector<8x128xf32>
    %106 = arith.addf %104, %105 : vector<8x128xf32>
    %cst_42 = arith.constant 5.000000e-01 : f32
    %107 = vector.broadcast %cst_42 : f32 to vector<8x128xf32>
    %108 = arith.mulf %107, %106 : vector<8x128xf32>
    %109 = arith.mulf %98, %76 : vector<8x128xf32>
    %110 = arith.mulf %90, %100 : vector<8x128xf32>
    %111 = arith.addf %109, %110 : vector<8x128xf32>
    %112 = math.tanh %111 : vector<8x128xf32>
    %113 = arith.mulf %108, %112 : vector<8x128xf32>
    %cst_43 = arith.constant dense<0.000000e+00> : vector<8x512xf32>
    %114 = tpu.matmul %113, %7, %cst_43 {dimension_numbers = #tpu.dot_dimension_numbers<[1], [0], [0], [1], [0, 0, 1, 1], [], []>} : vector<8x128xf32>, vector<128x512xf32>, vector<8x512xf32> -> vector<8x512xf32>
    %115 = arith.addf %114, %10 : vector<8x512xf32>
    %116 = vector.extract_strided_slice %115 {offsets = [0, 416], sizes = [8, 16], strides = [1, 1]} : vector<8x512xf32> to vector<8x16xf32>
    %c0_44 = arith.constant 0 : index
    %c32 = arith.constant 32 : index
    %117 = vector.load %arg7[%c0_44, %c32] : memref<8x128xf32, #tpu.memory_space<vmem>>, vector<8x16xf32>
    tpu.vector_store %arg7[%c0_44, %c32], %116 {strides = array<i32>} : memref<8x128xf32, #tpu.memory_space<vmem>>, vector<8x16xf32>,
    %118 = vector.extract_strided_slice %115 {offsets = [0, 0], sizes = [8, 128], strides = [1, 1]} : vector<8x512xf32> to vector<8x128xf32>
    %cst_45 = arith.constant 5.000000e-01 : f32
    %119 = vector.broadcast %cst_45 : f32 to vector<8x128xf32>
    %120 = arith.mulf %119, %118 : vector<8x128xf32>
    %121 = math.tanh %120 : vector<8x128xf32>
    %cst_46 = arith.constant 1.000000e+00 : f32
    %122 = vector.broadcast %cst_46 : f32 to vector<8x128xf32>
    %123 = arith.addf %121, %122 : vector<8x128xf32>
    %cst_47 = arith.constant 5.000000e-01 : f32
    %124 = vector.broadcast %cst_47 : f32 to vector<8x128xf32>
    %125 = arith.mulf %124, %123 : vector<8x128xf32>
    %126 = vector.extract_strided_slice %115 {offsets = [0, 128], sizes = [8, 128], strides = [1, 1]} : vector<8x512xf32> to vector<8x128xf32>
    %cst_48 = arith.constant 5.000000e-01 : f32
    %127 = vector.broadcast %cst_48 : f32 to vector<8x128xf32>
    %128 = arith.mulf %127, %126 : vector<8x128xf32>
    %129 = math.tanh %128 : vector<8x128xf32>
    %cst_49 = arith.constant 1.000000e+00 : f32
    %130 = vector.broadcast %cst_49 : f32 to vector<8x128xf32>
    %131 = arith.addf %129, %130 : vector<8x128xf32>
    %cst_50 = arith.constant 5.000000e-01 : f32
    %132 = vector.broadcast %cst_50 : f32 to vector<8x128xf32>
    %133 = arith.mulf %132, %131 : vector<8x128xf32>
    %134 = vector.extract_strided_slice %115 {offsets = [0, 256], sizes = [8, 128], strides = [1, 1]} : vector<8x512xf32> to vector<8x128xf32>
    %135 = math.tanh %134 : vector<8x128xf32>
    %136 = vector.extract_strided_slice %115 {offsets = [0, 384], sizes = [8, 128], strides = [1, 1]} : vector<8x512xf32> to vector<8x128xf32>
    %cst_51 = arith.constant 5.000000e-01 : f32
    %137 = vector.broadcast %cst_51 : f32 to vector<8x128xf32>
    %138 = arith.mulf %137, %136 : vector<8x128xf32>
    %139 = math.tanh %138 : vector<8x128xf32>
    %cst_52 = arith.constant 1.000000e+00 : f32
    %140 = vector.broadcast %cst_52 : f32 to vector<8x128xf32>
    %141 = arith.addf %139, %140 : vector<8x128xf32>
    %cst_53 = arith.constant 5.000000e-01 : f32
    %142 = vector.broadcast %cst_53 : f32 to vector<8x128xf32>
    %143 = arith.mulf %142, %141 : vector<8x128xf32>
    %144 = arith.mulf %133, %111 : vector<8x128xf32>
    %145 = arith.mulf %125, %135 : vector<8x128xf32>
    %146 = arith.addf %144, %145 : vector<8x128xf32>
    %147 = math.tanh %146 : vector<8x128xf32>
    %148 = arith.mulf %143, %147 : vector<8x128xf32>
    %cst_54 = arith.constant dense<0.000000e+00> : vector<8x512xf32>
    %149 = tpu.matmul %148, %7, %cst_54 {dimension_numbers = #tpu.dot_dimension_numbers<[1], [0], [0], [1], [0, 0, 1, 1], [], []>} : vector<8x128xf32>, vector<128x512xf32>, vector<8x512xf32> -> vector<8x512xf32>
    %150 = arith.addf %149, %10 : vector<8x512xf32>
    %151 = vector.extract_strided_slice %150 {offsets = [0, 416], sizes = [8, 16], strides = [1, 1]} : vector<8x512xf32> to vector<8x16xf32>
    %c0_55 = arith.constant 0 : index
    %c48 = arith.constant 48 : index
    %152 = vector.load %arg7[%c0_55, %c48] : memref<8x128xf32, #tpu.memory_space<vmem>>, vector<8x16xf32>
    tpu.vector_store %arg7[%c0_55, %c48], %151 {strides = array<i32>} : memref<8x128xf32, #tpu.memory_space<vmem>>, vector<8x16xf32>,
    %153 = vector.extract_strided_slice %150 {offsets = [0, 0], sizes = [8, 128], strides = [1, 1]} : vector<8x512xf32> to vector<8x128xf32>
    %cst_56 = arith.constant 5.000000e-01 : f32
    %154 = vector.broadcast %cst_56 : f32 to vector<8x128xf32>
    %155 = arith.mulf %154, %153 : vector<8x128xf32>
    %156 = math.tanh %155 : vector<8x128xf32>
    %cst_57 = arith.constant 1.000000e+00 : f32
    %157 = vector.broadcast %cst_57 : f32 to vector<8x128xf32>
    %158 = arith.addf %156, %157 : vector<8x128xf32>
    %cst_58 = arith.constant 5.000000e-01 : f32
    %159 = vector.broadcast %cst_58 : f32 to vector<8x128xf32>
    %160 = arith.mulf %159, %158 : vector<8x128xf32>
    %161 = vector.extract_strided_slice %150 {offsets = [0, 128], sizes = [8, 128], strides = [1, 1]} : vector<8x512xf32> to vector<8x128xf32>
    %cst_59 = arith.constant 5.000000e-01 : f32
    %162 = vector.broadcast %cst_59 : f32 to vector<8x128xf32>
    %163 = arith.mulf %162, %161 : vector<8x128xf32>
    %164 = math.tanh %163 : vector<8x128xf32>
    %cst_60 = arith.constant 1.000000e+00 : f32
    %165 = vector.broadcast %cst_60 : f32 to vector<8x128xf32>
    %166 = arith.addf %164, %165 : vector<8x128xf32>
    %cst_61 = arith.constant 5.000000e-01 : f32
    %167 = vector.broadcast %cst_61 : f32 to vector<8x128xf32>
    %168 = arith.mulf %167, %166 : vector<8x128xf32>
    %169 = vector.extract_strided_slice %150 {offsets = [0, 256], sizes = [8, 128], strides = [1, 1]} : vector<8x512xf32> to vector<8x128xf32>
    %170 = math.tanh %169 : vector<8x128xf32>
    %171 = vector.extract_strided_slice %150 {offsets = [0, 384], sizes = [8, 128], strides = [1, 1]} : vector<8x512xf32> to vector<8x128xf32>
    %cst_62 = arith.constant 5.000000e-01 : f32
    %172 = vector.broadcast %cst_62 : f32 to vector<8x128xf32>
    %173 = arith.mulf %172, %171 : vector<8x128xf32>
    %174 = math.tanh %173 : vector<8x128xf32>
    %cst_63 = arith.constant 1.000000e+00 : f32
    %175 = vector.broadcast %cst_63 : f32 to vector<8x128xf32>
    %176 = arith.addf %174, %175 : vector<8x128xf32>
    %cst_64 = arith.constant 5.000000e-01 : f32
    %177 = vector.broadcast %cst_64 : f32 to vector<8x128xf32>
    %178 = arith.mulf %177, %176 : vector<8x128xf32>
    %179 = arith.mulf %168, %146 : vector<8x128xf32>
    %180 = arith.mulf %160, %170 : vector<8x128xf32>
    %181 = arith.addf %179, %180 : vector<8x128xf32>
    %182 = math.tanh %181 : vector<8x128xf32>
    %183 = arith.mulf %178, %182 : vector<8x128xf32>
    %cst_65 = arith.constant dense<0.000000e+00> : vector<8x512xf32>
    %184 = tpu.matmul %183, %7, %cst_65 {dimension_numbers = #tpu.dot_dimension_numbers<[1], [0], [0], [1], [0, 0, 1, 1], [], []>} : vector<8x128xf32>, vector<128x512xf32>, vector<8x512xf32> -> vector<8x512xf32>
    %185 = arith.addf %184, %10 : vector<8x512xf32>
    %186 = vector.extract_strided_slice %185 {offsets = [0, 416], sizes = [8, 16], strides = [1, 1]} : vector<8x512xf32> to vector<8x16xf32>
    %c0_66 = arith.constant 0 : index
    %c64 = arith.constant 64 : index
    %187 = vector.load %arg7[%c0_66, %c64] : memref<8x128xf32, #tpu.memory_space<vmem>>, vector<8x16xf32>
    tpu.vector_store %arg7[%c0_66, %c64], %186 {strides = array<i32>} : memref<8x128xf32, #tpu.memory_space<vmem>>, vector<8x16xf32>,
    %188 = vector.extract_strided_slice %185 {offsets = [0, 0], sizes = [8, 128], strides = [1, 1]} : vector<8x512xf32> to vector<8x128xf32>
    %cst_67 = arith.constant 5.000000e-01 : f32
    %189 = vector.broadcast %cst_67 : f32 to vector<8x128xf32>
    %190 = arith.mulf %189, %188 : vector<8x128xf32>
    %191 = math.tanh %190 : vector<8x128xf32>
    %cst_68 = arith.constant 1.000000e+00 : f32
    %192 = vector.broadcast %cst_68 : f32 to vector<8x128xf32>
    %193 = arith.addf %191, %192 : vector<8x128xf32>
    %cst_69 = arith.constant 5.000000e-01 : f32
    %194 = vector.broadcast %cst_69 : f32 to vector<8x128xf32>
    %195 = arith.mulf %194, %193 : vector<8x128xf32>
    %196 = vector.extract_strided_slice %185 {offsets = [0, 128], sizes = [8, 128], strides = [1, 1]} : vector<8x512xf32> to vector<8x128xf32>
    %cst_70 = arith.constant 5.000000e-01 : f32
    %197 = vector.broadcast %cst_70 : f32 to vector<8x128xf32>
    %198 = arith.mulf %197, %196 : vector<8x128xf32>
    %199 = math.tanh %198 : vector<8x128xf32>
    %cst_71 = arith.constant 1.000000e+00 : f32
    %200 = vector.broadcast %cst_71 : f32 to vector<8x128xf32>
    %201 = arith.addf %199, %200 : vector<8x128xf32>
    %cst_72 = arith.constant 5.000000e-01 : f32
    %202 = vector.broadcast %cst_72 : f32 to vector<8x128xf32>
    %203 = arith.mulf %202, %201 : vector<8x128xf32>
    %204 = vector.extract_strided_slice %185 {offsets = [0, 256], sizes = [8, 128], strides = [1, 1]} : vector<8x512xf32> to vector<8x128xf32>
    %205 = math.tanh %204 : vector<8x128xf32>
    %206 = vector.extract_strided_slice %185 {offsets = [0, 384], sizes = [8, 128], strides = [1, 1]} : vector<8x512xf32> to vector<8x128xf32>
    %cst_73 = arith.constant 5.000000e-01 : f32
    %207 = vector.broadcast %cst_73 : f32 to vector<8x128xf32>
    %208 = arith.mulf %207, %206 : vector<8x128xf32>
    %209 = math.tanh %208 : vector<8x128xf32>
    %cst_74 = arith.constant 1.000000e+00 : f32
    %210 = vector.broadcast %cst_74 : f32 to vector<8x128xf32>
    %211 = arith.addf %209, %210 : vector<8x128xf32>
    %cst_75 = arith.constant 5.000000e-01 : f32
    %212 = vector.broadcast %cst_75 : f32 to vector<8x128xf32>
    %213 = arith.mulf %212, %211 : vector<8x128xf32>
    %214 = arith.mulf %203, %181 : vector<8x128xf32>
    %215 = arith.mulf %195, %205 : vector<8x128xf32>
    %216 = arith.addf %214, %215 : vector<8x128xf32>
    %217 = math.tanh %216 : vector<8x128xf32>
    %218 = arith.mulf %213, %217 : vector<8x128xf32>
    %cst_76 = arith.constant dense<0.000000e+00> : vector<8x512xf32>
    %219 = tpu.matmul %218, %7, %cst_76 {dimension_numbers = #tpu.dot_dimension_numbers<[1], [0], [0], [1], [0, 0, 1, 1], [], []>} : vector<8x128xf32>, vector<128x512xf32>, vector<8x512xf32> -> vector<8x512xf32>
    %220 = arith.addf %219, %10 : vector<8x512xf32>
    %221 = vector.extract_strided_slice %220 {offsets = [0, 416], sizes = [8, 16], strides = [1, 1]} : vector<8x512xf32> to vector<8x16xf32>
    %c0_77 = arith.constant 0 : index
    %c80 = arith.constant 80 : index
    %222 = vector.load %arg7[%c0_77, %c80] : memref<8x128xf32, #tpu.memory_space<vmem>>, vector<8x16xf32>
    tpu.vector_store %arg7[%c0_77, %c80], %221 {strides = array<i32>} : memref<8x128xf32, #tpu.memory_space<vmem>>, vector<8x16xf32>,
    %223 = vector.extract_strided_slice %220 {offsets = [0, 0], sizes = [8, 128], strides = [1, 1]} : vector<8x512xf32> to vector<8x128xf32>
    %cst_78 = arith.constant 5.000000e-01 : f32
    %224 = vector.broadcast %cst_78 : f32 to vector<8x128xf32>
    %225 = arith.mulf %224, %223 : vector<8x128xf32>
    %226 = math.tanh %225 : vector<8x128xf32>
    %cst_79 = arith.constant 1.000000e+00 : f32
    %227 = vector.broadcast %cst_79 : f32 to vector<8x128xf32>
    %228 = arith.addf %226, %227 : vector<8x128xf32>
    %cst_80 = arith.constant 5.000000e-01 : f32
    %229 = vector.broadcast %cst_80 : f32 to vector<8x128xf32>
    %230 = arith.mulf %229, %228 : vector<8x128xf32>
    %231 = vector.extract_strided_slice %220 {offsets = [0, 128], sizes = [8, 128], strides = [1, 1]} : vector<8x512xf32> to vector<8x128xf32>
    %cst_81 = arith.constant 5.000000e-01 : f32
    %232 = vector.broadcast %cst_81 : f32 to vector<8x128xf32>
    %233 = arith.mulf %232, %231 : vector<8x128xf32>
    %234 = math.tanh %233 : vector<8x128xf32>
    %cst_82 = arith.constant 1.000000e+00 : f32
    %235 = vector.broadcast %cst_82 : f32 to vector<8x128xf32>
    %236 = arith.addf %234, %235 : vector<8x128xf32>
    %cst_83 = arith.constant 5.000000e-01 : f32
    %237 = vector.broadcast %cst_83 : f32 to vector<8x128xf32>
    %238 = arith.mulf %237, %236 : vector<8x128xf32>
    %239 = vector.extract_strided_slice %220 {offsets = [0, 256], sizes = [8, 128], strides = [1, 1]} : vector<8x512xf32> to vector<8x128xf32>
    %240 = math.tanh %239 : vector<8x128xf32>
    %241 = vector.extract_strided_slice %220 {offsets = [0, 384], sizes = [8, 128], strides = [1, 1]} : vector<8x512xf32> to vector<8x128xf32>
    %cst_84 = arith.constant 5.000000e-01 : f32
    %242 = vector.broadcast %cst_84 : f32 to vector<8x128xf32>
    %243 = arith.mulf %242, %241 : vector<8x128xf32>
    %244 = math.tanh %243 : vector<8x128xf32>
    %cst_85 = arith.constant 1.000000e+00 : f32
    %245 = vector.broadcast %cst_85 : f32 to vector<8x128xf32>
    %246 = arith.addf %244, %245 : vector<8x128xf32>
    %cst_86 = arith.constant 5.000000e-01 : f32
    %247 = vector.broadcast %cst_86 : f32 to vector<8x128xf32>
    %248 = arith.mulf %247, %246 : vector<8x128xf32>
    %249 = arith.mulf %238, %216 : vector<8x128xf32>
    %250 = arith.mulf %230, %240 : vector<8x128xf32>
    %251 = arith.addf %249, %250 : vector<8x128xf32>
    %252 = math.tanh %251 : vector<8x128xf32>
    %253 = arith.mulf %248, %252 : vector<8x128xf32>
    %cst_87 = arith.constant dense<0.000000e+00> : vector<8x512xf32>
    %254 = tpu.matmul %253, %7, %cst_87 {dimension_numbers = #tpu.dot_dimension_numbers<[1], [0], [0], [1], [0, 0, 1, 1], [], []>} : vector<8x128xf32>, vector<128x512xf32>, vector<8x512xf32> -> vector<8x512xf32>
    %255 = arith.addf %254, %10 : vector<8x512xf32>
    %256 = vector.extract_strided_slice %255 {offsets = [0, 416], sizes = [8, 16], strides = [1, 1]} : vector<8x512xf32> to vector<8x16xf32>
    %c0_88 = arith.constant 0 : index
    %c96 = arith.constant 96 : index
    %257 = vector.load %arg7[%c0_88, %c96] : memref<8x128xf32, #tpu.memory_space<vmem>>, vector<8x16xf32>
    tpu.vector_store %arg7[%c0_88, %c96], %256 {strides = array<i32>} : memref<8x128xf32, #tpu.memory_space<vmem>>, vector<8x16xf32>,
    %258 = vector.extract_strided_slice %255 {offsets = [0, 0], sizes = [8, 128], strides = [1, 1]} : vector<8x512xf32> to vector<8x128xf32>
    %cst_89 = arith.constant 5.000000e-01 : f32
    %259 = vector.broadcast %cst_89 : f32 to vector<8x128xf32>
    %260 = arith.mulf %259, %258 : vector<8x128xf32>
    %261 = math.tanh %260 : vector<8x128xf32>
    %cst_90 = arith.constant 1.000000e+00 : f32
    %262 = vector.broadcast %cst_90 : f32 to vector<8x128xf32>
    %263 = arith.addf %261, %262 : vector<8x128xf32>
    %cst_91 = arith.constant 5.000000e-01 : f32
    %264 = vector.broadcast %cst_91 : f32 to vector<8x128xf32>
    %265 = arith.mulf %264, %263 : vector<8x128xf32>
    %266 = vector.extract_strided_slice %255 {offsets = [0, 128], sizes = [8, 128], strides = [1, 1]} : vector<8x512xf32> to vector<8x128xf32>
    %cst_92 = arith.constant 5.000000e-01 : f32
    %267 = vector.broadcast %cst_92 : f32 to vector<8x128xf32>
    %268 = arith.mulf %267, %266 : vector<8x128xf32>
    %269 = math.tanh %268 : vector<8x128xf32>
    %cst_93 = arith.constant 1.000000e+00 : f32
    %270 = vector.broadcast %cst_93 : f32 to vector<8x128xf32>
    %271 = arith.addf %269, %270 : vector<8x128xf32>
    %cst_94 = arith.constant 5.000000e-01 : f32
    %272 = vector.broadcast %cst_94 : f32 to vector<8x128xf32>
    %273 = arith.mulf %272, %271 : vector<8x128xf32>
    %274 = vector.extract_strided_slice %255 {offsets = [0, 256], sizes = [8, 128], strides = [1, 1]} : vector<8x512xf32> to vector<8x128xf32>
    %275 = math.tanh %274 : vector<8x128xf32>
    %276 = vector.extract_strided_slice %255 {offsets = [0, 384], sizes = [8, 128], strides = [1, 1]} : vector<8x512xf32> to vector<8x128xf32>
    %cst_95 = arith.constant 5.000000e-01 : f32
    %277 = vector.broadcast %cst_95 : f32 to vector<8x128xf32>
    %278 = arith.mulf %277, %276 : vector<8x128xf32>
    %279 = math.tanh %278 : vector<8x128xf32>
    %cst_96 = arith.constant 1.000000e+00 : f32
    %280 = vector.broadcast %cst_96 : f32 to vector<8x128xf32>
    %281 = arith.addf %279, %280 : vector<8x128xf32>
    %cst_97 = arith.constant 5.000000e-01 : f32
    %282 = vector.broadcast %cst_97 : f32 to vector<8x128xf32>
    %283 = arith.mulf %282, %281 : vector<8x128xf32>
    %284 = arith.mulf %273, %251 : vector<8x128xf32>
    %285 = arith.mulf %265, %275 : vector<8x128xf32>
    %286 = arith.addf %284, %285 : vector<8x128xf32>
    %287 = math.tanh %286 : vector<8x128xf32>
    %288 = arith.mulf %283, %287 : vector<8x128xf32>
    %c0_98 = arith.constant 0 : index
    %c0_99 = arith.constant 0 : index
    %289 = vector.load %arg5[%c0_98, %c0_99] : memref<128x16xf32, #tpu.memory_space<vmem>>, vector<128x16xf32>
    %cst_100 = arith.constant dense<0.000000e+00> : vector<8x16xf32>
    %290 = tpu.matmul %288, %289, %cst_100 {dimension_numbers = #tpu.dot_dimension_numbers<[1], [0], [0], [1], [0, 0, 1, 1], [], []>} : vector<8x128xf32>, vector<128x16xf32>, vector<8x16xf32> -> vector<8x16xf32>
    %c0_101 = arith.constant 0 : index
    %c0_102 = arith.constant 0 : index
    %291 = vector.load %arg6[%c0_101, %c0_102] : memref<1x16xf32, #tpu.memory_space<vmem>>, vector<1x16xf32>
    %292 = vector.broadcast %291 : vector<1x16xf32> to vector<8x16xf32>
    %293 = arith.addf %290, %292 : vector<8x16xf32>
    %c0_103 = arith.constant 0 : index
    %c112 = arith.constant 112 : index
    %294 = vector.load %arg7[%c0_103, %c112] : memref<8x128xf32, #tpu.memory_space<vmem>>, vector<8x16xf32>
    tpu.vector_store %arg7[%c0_103, %c112], %293 {strides = array<i32>} : memref<8x128xf32, #tpu.memory_space<vmem>>, vector<8x16xf32>,
    return
  }
}

</mosaic_0001>

<bundles_post_ra>
// kernel: tpu_custom_call.1
= control target key start
LH: loop header
LB: loop body
LE: loop exit
PB: predicated region body
PF: predicated region fallthrough
CT: control target
= control target key end

     0   :  { %12 = vsyncpa [#allocation3], 0  ;;  %s2932_s0 = inlined_call_operand.vmem [shape: f32[8,8], index: 0, kind: input, shape index: {}]   ;;  %s2933_s1 = inlined_call_operand.vmem [shape: f32[8,128], index: 1, kind: input, shape index: {}]   ;;  %s2934_s2 = inlined_call_operand.vmem [shape: f32[1,128], index: 2, kind: input, shape index: {}]   ;;  %s2935_s3 = inlined_call_operand.hbm [shape: f32[128,512], index: 3, kind: input, shape index: {}]   ;;  %s2936_s4 = inlined_call_operand.vmem [shape: f32[1,512], index: 4, kind: input, shape index: {}]   ;;  %s2937_s5 = inlined_call_operand.vmem [shape: f32[128,16], index: 5, kind: input, shape index: {}]   ;;  %s2938_s6 = inlined_call_operand.vmem [shape: f32[1,16], index: 6, kind: input, shape index: {}]   ;;  %s2939_s7 = inlined_call_operand.hbm [shape: f32[8,128], index: 7, kind: output, shape index: {}]  }
   0x1   :  { %13 = vsyncpa [#allocation4], 0  ;;  %s2380_s24 = smov [#allocation2]   ;;  %s2332_s28 = scalar_lea.hbm %s2935_s3, 8192 }
   0x2   :  { %s25_s25 = sshll.u32 %s2380_s24, 4  ;;  %p2333_p0 = scmp.ne.s32.totalorder %s2935_s3, %s2332_s28  ;;  %s26_s25 = int_to_ptr.vmem [resolvable:$true] %s25_s25 }
   0x3   :  { %p2336_p1 = scmp.lt.u32.totalorder %s2332_s28, %s2935_s3 }
   0x5   :  { %p2338_p2 = pnand %p2336_p1, %p2333_p0 }
   0x7   :  { %2341 = shalt.err (!%p2338_p2)
}
   0x8   :  { %s2342_s10 = scalar_lea.vmem %s26_s25, 8192  ;;  %p2347_p4 = scmp.lt.s32.totalorder %s26_s25, %s26_s25 }
   0x9   :  { %p2343_p3 = scmp.ne.s32.totalorder %s26_s25, %s2342_s10  ;;  %p2348_p5 = scmp.lt.s32.totalorder %s2342_s10, %s2342_s10 }
   0xb   :  { %p2349_p6 = por %p2348_p5, %p2347_p4 }
   0xd   :  { %p2350_p7 = pnand %p2349_p6, %p2343_p3 }
   0xf   :  { %2353 = shalt.err (!%p2350_p7)
}
  0x10   :  { %s2381_s11 = smov 512   ;;  %s2382_s12 = smov 32  }
  0x11   :  { %31 = dma.hbm_to_vmem [thread:$0]  %s2935_s3, 8192, %s26_s25, [#allocation3], %s2381_s11, %s2381_s11, %s2382_s12  }
  0x12   :  { %2376 = dma.done.wait [#allocation3], 8192  }
  0x13   :  { %2377 = vsyncadd [#allocation3], 4294959104  ;;  %v2383_v0 = vmov 0.0   ;;  %vm2384_vm0 = vmmov 0   ;;  %vm50_vm1 = vcmask 64512   ;;  %v42_v1 = vld [vmem:[%s2933_s1] sm:$0xff] }
  0x14   :  { %1664 = vmatprep.subr.mxu0 %v2383_v0  ;;  %1666 = vmatprep.mubr.msk.f32.mxu0 %vm2384_vm0, %v2383_v0  ;;  %v41_v2 = vld [vmem:[%s2932_s0] sm:$0xff]  ;;  %v125_v3 = vld [vmem:[#allocation2 + $0x8] sm:$0xff]  ;;  %v127_v5 = vld [vmem:[#allocation2 + $0x18] sm:$0xff]  ;;  %vm516_vm2 = vcmask 130048   ;;  %s2386_s19 = smov 112   ;;  %vm682_vm3 = vcmask 261248  }
  0x15   :  { %274 = vmatprep.mubr.f32.mxu1 %v2383_v0  ;;  %1665 = vmatpush3.msra.mxu0 %v42_v1  ;;  %v129_v4 = vld [vmem:[#allocation2 + $0x28] sm:$0xff]  ;;  %v131_v6 = vld [vmem:[#allocation2 + $0x38] sm:$0xff]  ;;  %v124_v9 = vld [vmem:[#allocation2] sm:$0xff]  ;;  %vm844_vm4 = vcmask 392448   ;;  %s2387_s20 = smov 16   ;;  %vm1010_vm5 = vcmask 523648  }
  0x16   :  { %1667 = vmatmul.mubr.msk.f32.vlgmr.msra.gmra.mrb[0].mxu0 %vm50_vm1, %v41_v2  ;;  %v2455_v7 = vpack.c.bf16 %v129_v4, %v125_v3  ;;  %v2457_v8 = vpack.c.bf16 %v131_v6, %v127_v5  ;;  %v128_v10 = vld [vmem:[#allocation2 + $0x20] sm:$0xff]  ;;  %v126_v11 = vld [vmem:[#allocation2 + $0x10] sm:$0xff]  ;;  %v133_v14 = vld [vmem:[#allocation2 + $0x48] sm:$0xff]  ;;  %vm1176_vm6 = vcmask 654848   ;;  %s2388_s21 = smov 48   ;;  %vm1342_vm7 = vcmask 786048  }
  0x17   :  { %v2459_v12 = vpack.c.bf16 %v128_v10, %v124_v9  ;;  %v130_v13 = vld [vmem:[#allocation2 + $0x30] sm:$0xff]  ;;  %v137_v15 = vld [vmem:[#allocation2 + $0x68] sm:$0xff]  ;;  %345 = vmatprep.mubr.f32.mxu0 %v2383_v0  ;;  %v135_v18 = vld [vmem:[#allocation2 + $0x58] sm:$0xff]  ;;  %s2390_s27 = smov 64   ;;  %vm1508_vm8 = vcmask 917248   ;;  %s2391_s29 = smov [#allocation5]  }
  0x18   :  { %1705 = vmatprep.subr.bf16.mxu1 %v2455_v7  ;;  %1737 = vmatprep.subr.bf16.mxu0 %v2457_v8  ;;  %v2464_v16 = vpack.c.bf16 %v130_v13, %v126_v11  ;;  %v2466_v17 = vpack.c.bf16 %v137_v15, %v133_v14  ;;  %v139_v19 = vld [vmem:[#allocation2 + $0x78] sm:$0xff]  ;;  %v132_v20 = vld [vmem:[#allocation2 + $0x40] sm:$0xff]  ;;  %v134_v23 = vld [vmem:[#allocation2 + $0x50] sm:$0xff]  ;;  %s1633_s30 = sshll.u32 %s2391_s29, 4  ;;  %vm1625_vm9 = vcmask 1048448   ;;  %s1634_s30 = int_to_ptr.vmem [resolvable:$true] %s1633_s30 }
  0x19   :  { %1707 = vmatpush1.bf16.msra.mxu1 %v2459_v12  ;;  %v2469_v21 = vpack.c.bf16 %v139_v19, %v135_v18  ;;  %v136_v22 = vld [vmem:[#allocation2 + $0x60] sm:$0xff]  ;;  %v138_v24 = vld [vmem:[#allocation2 + $0x70] sm:$0xff]  ;;  %v141_v27 = vld [vmem:[#allocation2 + $0x88] sm:$0xff]  ;;  %s2354_s8 = scalar_lea.vmem %s1634_s30, 128  ;;  %p2359_p9 = scmp.lt.s32.totalorder %s1634_s30, %s1634_s30 }
  0x1a   :  { %1739 = vmatpush1.bf16.msra.mxu0 %v2464_v16  ;;  %1709 = vmatprep.subr.bf16.mxu1 %v2466_v17  ;;  %v2473_v25 = vpack.c.bf16 %v136_v22, %v132_v20  ;;  %v2475_v26 = vpack.c.bf16 %v138_v24, %v134_v23  ;;  %v145_v28 = vld [vmem:[#allocation2 + $0xa8] sm:$0xff]  ;;  %v143_v29 = vld [vmem:[#allocation2 + $0x98] sm:$0xff]  ;;  %v140_v32 = vld [vmem:[#allocation2 + $0x80] sm:$0xff]  ;;  %p2355_p8 = scmp.ne.s32.totalorder %s1634_s30, %s2354_s8  ;;  %p2360_p10 = scmp.lt.s32.totalorder %s2354_s8, %s2354_s8 }
  0x1b   :  { %1741 = vmatprep.subr.bf16.mxu0 %v2469_v21  ;;  %v2478_v30 = vpack.c.bf16 %v145_v28, %v141_v27  ;;  %v147_v31 = vld [vmem:[#allocation2 + $0xb8] sm:$0xff]  ;;  %v144_v33 = vld [vmem:[#allocation2 + $0xa0] sm:$0xff]  ;;  %v142_v35 = vld [vmem:[#allocation2 + $0x90] sm:$0xff] }
  0x1c   :  { %v2480_v34 = vpack.c.bf16 %v147_v31, %v143_v29  ;;  %v146_v36 = vld [vmem:[#allocation2 + $0xb0] sm:$0xff]  ;;  %v149_v37 = vld [vmem:[#allocation2 + $0xc8] sm:$0xff]  ;;  %v2483_v38 = vpack.c.bf16 %v144_v33, %v140_v32  ;;  %v151_v40 = vld [vmem:[#allocation2 + $0xd8] sm:$0xff]  ;;  %p2361_p11 = por %p2360_p10, %p2359_p9 }
  0x1d   :  { %1711 = vmatpush1.bf16.msra.mxu1 %v2473_v25  ;;  %v153_v39 = vld [vmem:[#allocation2 + $0xe8] sm:$0xff]  ;;  %v155_v41 = vld [vmem:[#allocation2 + $0xf8] sm:$0xff]  ;;  %v2487_v42 = vpack.c.bf16 %v146_v36, %v142_v35  ;;  %v148_v44 = vld [vmem:[#allocation2 + $0xc0] sm:$0xff] }
  0x1e   :  { %1743 = vmatpush1.bf16.msra.mxu0 %v2475_v26  ;;  %1713 = vmatprep.subr.bf16.mxu1 %v2478_v30  ;;  %v2489_v43 = vpack.c.bf16 %v153_v39, %v149_v37  ;;  %v152_v45 = vld [vmem:[#allocation2 + $0xe0] sm:$0xff]  ;;  %v150_v46 = vld [vmem:[#allocation2 + $0xd0] sm:$0xff]  ;;  %v2492_v47 = vpack.c.bf16 %v155_v41, %v151_v40  ;;  %v157_v49 = vld [vmem:[#allocation2 + $0x108] sm:$0xff]  ;;  %p2362_p12 = pnand %p2361_p11, %p2355_p8 }
  0x1f   :  { %1745 = vmatprep.subr.bf16.mxu0 %v2480_v34  ;;  %v154_v48 = vld [vmem:[#allocation2 + $0xf0] sm:$0xff]  ;;  %v161_v50 = vld [vmem:[#allocation2 + $0x128] sm:$0xff]  ;;  %v159_v51 = vld [vmem:[#allocation2 + $0x118] sm:$0xff]  ;;  %v2495_v53 = vpack.c.bf16 %v152_v45, %v148_v44 }
  0x20   :  { %v163_v52 = vld [vmem:[#allocation2 + $0x138] sm:$0xff]  ;;  %v2499_v54 = vpack.c.bf16 %v154_v48, %v150_v46  ;;  %v2501_v55 = vpack.c.bf16 %v161_v50, %v157_v49  ;;  %v156_v56 = vld [vmem:[#allocation2 + $0x100] sm:$0xff]  ;;  %v158_v58 = vld [vmem:[#allocation2 + $0x110] sm:$0xff] }
  0x21   :  { %1715 = vmatpush1.bf16.msra.mxu1 %v2483_v38  ;;  %v160_v57 = vld [vmem:[#allocation2 + $0x120] sm:$0xff]  ;;  %v2504_v59 = vpack.c.bf16 %v163_v52, %v159_v51  ;;  %v162_v60 = vld [vmem:[#allocation2 + $0x130] sm:$0xff]  ;;  %v165_v61 = vld [vmem:[#allocation2 + $0x148] sm:$0xff] }
  0x22   :  { %1747 = vmatpush1.bf16.msra.mxu0 %v2487_v42  ;;  %1717 = vmatprep.subr.bf16.mxu1 %v2489_v43  ;;  %v169_v62 = vld [vmem:[#allocation2 + $0x168] sm:$0xff]  ;;  %v167_v63 = vld [vmem:[#allocation2 + $0x158] sm:$0xff]  ;;  %v2507_v2 = vpack.c.bf16 %v160_v57, %v156_v56  ;;  %v2511_v3 = vpack.c.bf16 %v162_v60, %v158_v58  ;;  %v164_v5 = vld [vmem:[#allocation2 + $0x140] sm:$0xff]  ;;  %v190_v57 = vlaneseq }
  0x23   :  { %1749 = vmatprep.subr.bf16.mxu0 %v2492_v47  ;;  %v171_v1 = vld [vmem:[#allocation2 + $0x178] sm:$0xff]  ;;  %v2513_v4 = vpack.c.bf16 %v169_v62, %v165_v61  ;;  %v168_v6 = vld [vmem:[#allocation2 + $0x160] sm:$0xff]  ;;  %v166_v9 = vld [vmem:[#allocation2 + $0x150] sm:$0xff] }
  0x24   :  { %v2516_v10 = vpack.c.bf16 %v171_v1, %v167_v63  ;;  %v170_v11 = vld [vmem:[#allocation2 + $0x170] sm:$0xff]  ;;  %v173_v13 = vld [vmem:[#allocation2 + $0x188] sm:$0xff]  ;;  %v175_v15 = vld [vmem:[#allocation2 + $0x198] sm:$0xff]  ;;  %v2519_v19 = vpack.c.bf16 %v168_v6, %v164_v5  ;;  %v191_v58 = vshrl.u32 %v190_v57, 7 }
  0x25   :  { %1719 = vmatpush1.bf16.msra.mxu1 %v2495_v53  ;;  %v177_v14 = vld [vmem:[#allocation2 + $0x1a8] sm:$0xff]  ;;  %v179_v18 = vld [vmem:[#allocation2 + $0x1b8] sm:$0xff]  ;;  %v2523_v20 = vpack.c.bf16 %v170_v11, %v166_v9  ;;  %v172_v23 = vld [vmem:[#allocation2 + $0x180] sm:$0xff] }
  0x26   :  { %1751 = vmatpush1.bf16.msra.mxu0 %v2499_v54  ;;  %1721 = vmatprep.subr.bf16.mxu1 %v2501_v55  ;;  %v2525_v22 = vpack.c.bf16 %v177_v14, %v173_v13  ;;  %v176_v24 = vld [vmem:[#allocation2 + $0x1a0] sm:$0xff]  ;;  %v174_v27 = vld [vmem:[#allocation2 + $0x190] sm:$0xff]  ;;  %v2528_v28 = vpack.c.bf16 %v179_v18, %v175_v15  ;;  %v181_v31 = vld [vmem:[#allocation2 + $0x1c8] sm:$0xff]  ;;  %v192_v60 = vsub.s32 0, %v191_v58  ;;  %v196_v62 = vsub.s32 1, %v191_v58 }
  0x27   :  { %1753 = vmatprep.subr.bf16.mxu0 %v2504_v59  ;;  %v178_v29 = vld [vmem:[#allocation2 + $0x1b0] sm:$0xff]  ;;  %v185_v32 = vld [vmem:[#allocation2 + $0x1e8] sm:$0xff]  ;;  %v183_v33 = vld [vmem:[#allocation2 + $0x1d8] sm:$0xff]  ;;  %v2531_v36 = vpack.c.bf16 %v176_v24, %v172_v23  ;;  %v200_v1 = vsub.s32 2, %v191_v58  ;;  %v204_v15 = vsub.s32 3, %v191_v58 }
  0x28   :  { %v187_v35 = vld [vmem:[#allocation2 + $0x1f8] sm:$0xff]  ;;  %v2535_v37 = vpack.c.bf16 %v178_v29, %v174_v27  ;;  %v2537_v39 = vpack.c.bf16 %v185_v32, %v181_v31  ;;  %v180_v41 = vld [vmem:[#allocation2 + $0x1c0] sm:$0xff]  ;;  %v182_v45 = vld [vmem:[#allocation2 + $0x1d0] sm:$0xff] }
  0x29   :  { %1723 = vmatpush1.bf16.msra.mxu1 %v2507_v2  ;;  %v2540_v40 = vpack.c.bf16 %v187_v35, %v183_v33  ;;  %v184_v44 = vld [vmem:[#allocation2 + $0x1e0] sm:$0xff]  ;;  %v186_v48 = vld [vmem:[#allocation2 + $0x1f0] sm:$0xff] }
  0x2a   :  { %1755 = vmatpush1.bf16.msra.mxu0 %v2511_v3  ;;  %1725 = vmatprep.subr.bf16.mxu1 %v2513_v4  ;;  %v2546_v46 = vpack.c.bf16 %v184_v44, %v180_v41  ;;  %v2548_v49 = vpack.c.bf16 %v186_v48, %v182_v45  ;;  %v1642_v50 = vld [vmem:[%s2934_s2] ss:$0 sm:$0xff] }
  0x2b   :  { %1757 = vmatprep.subr.bf16.mxu0 %v2516_v10  ;;  %v188_v61 = vld [vmem:[%s2936_s4] sm:$0xf]  ;;  %s2385_s4 = smov 96  }
  0x2c   :  { %v2594_v63 = vrot.slane %v188_v61, %v192_v60  ;;  %v2596_v5 = vrot.slane %v188_v61, %v196_v62  ;;  %v2599_v13 = vrot.slane %v188_v61, %v200_v1  ;;  %v2603_v31 = vrot.slane %v188_v61, %v204_v15 }
  0x2d   :  { %1727 = vmatpush1.bf16.msra.mxu1 %v2519_v19 }
  0x2e   :  { %1759 = vmatpush1.bf16.msra.mxu0 %v2523_v20  ;;  %1729 = vmatprep.subr.bf16.mxu1 %v2525_v22 }
  0x2f   :  { %1761 = vmatprep.subr.bf16.mxu0 %v2528_v28 }
  0x31   :  { %1731 = vmatpush1.bf16.msra.mxu1 %v2531_v36 }
  0x32   :  { %1763 = vmatpush1.bf16.msra.mxu0 %v2535_v37  ;;  %1733 = vmatprep.subr.bf16.mxu1 %v2537_v39 }
  0x33   :  { %1765 = vmatprep.subr.bf16.mxu0 %v2540_v40 }
  0x35   :  { %1735 = vmatpush1.bf16.msra.mxu1 %v2546_v46 }
  0x36   :  { %1767 = vmatpush1.bf16.msra.mxu0 %v2548_v49  ;;  %1769 = vmatprep.subr.bf16.mxu1 %v2455_v7 }
  0x37   :  { %1801 = vmatprep.subr.bf16.mxu0 %v2457_v8 }
  0xe9   :  { %v120_v51 = vpop.f32.mrb[0].mxu0 }
  0xea   :  { %v121_v52 = vadd.f32 %v1642_v50, %v120_v51  ;;  %v1668_v56 = vpop.f32.mrb[1].mxu0 }
  0xec   :  { %275 = vmatmul.mubr.f32.vlgmr.msra.gmra.mrb[0].mxu1 %v121_v52  ;;  %346 = vmatmul.mubr.f32.vlgmr.msra.gmra.mrb[2].mxu0 %v121_v52 }
  0xed   :  { %1771 = vmatpush1.bf16.msra.mxu1 %v2459_v12  ;;  %1803 = vmatpush1.bf16.msra.mxu0 %v2464_v16 }
  0xee   :  { %1773 = vmatprep.subr.bf16.mxu1 %v2466_v17  ;;  %1805 = vmatprep.subr.bf16.mxu0 %v2469_v21 }
  0xef   :  { %434 = vmatprep.mubr.f32.mxu1 %v2383_v0  ;;  %505 = vmatprep.mubr.f32.mxu0 %v2383_v0 }
  0xf1   :  { %1775 = vmatpush1.bf16.msra.mxu1 %v2473_v25  ;;  %1807 = vmatpush1.bf16.msra.mxu0 %v2475_v26 }
  0xf2   :  { %1777 = vmatprep.subr.bf16.mxu1 %v2478_v30  ;;  %1809 = vmatprep.subr.bf16.mxu0 %v2480_v34 }
  0xf5   :  { %1779 = vmatpush1.bf16.msra.mxu1 %v2483_v38  ;;  %1811 = vmatpush1.bf16.msra.mxu0 %v2487_v42 }
  0xf6   :  { %1781 = vmatprep.subr.bf16.mxu1 %v2489_v43  ;;  %1813 = vmatprep.subr.bf16.mxu0 %v2492_v47 }
  0xf9   :  { %1783 = vmatpush1.bf16.msra.mxu1 %v2495_v53  ;;  %1815 = vmatpush1.bf16.msra.mxu0 %v2499_v54 }
  0xfa   :  { %1785 = vmatprep.subr.bf16.mxu1 %v2501_v55  ;;  %1817 = vmatprep.subr.bf16.mxu0 %v2504_v59 }
  0xfd   :  { %1787 = vmatpush1.bf16.msra.mxu1 %v2507_v2  ;;  %1819 = vmatpush1.bf16.msra.mxu0 %v2511_v3 }
  0xfe   :  { %1789 = vmatprep.subr.bf16.mxu1 %v2513_v4  ;;  %1821 = vmatprep.subr.bf16.mxu0 %v2516_v10 }
 0x101   :  { %1791 = vmatpush1.bf16.msra.mxu1 %v2519_v19  ;;  %1823 = vmatpush1.bf16.msra.mxu0 %v2523_v20 }
 0x102   :  { %1793 = vmatprep.subr.bf16.mxu1 %v2525_v22  ;;  %1825 = vmatprep.subr.bf16.mxu0 %v2528_v28 }
 0x105   :  { %1795 = vmatpush1.bf16.msra.mxu1 %v2531_v36  ;;  %1827 = vmatpush1.bf16.msra.mxu0 %v2535_v37 }
 0x106   :  { %1797 = vmatprep.subr.bf16.mxu1 %v2537_v39  ;;  %1829 = vmatprep.subr.bf16.mxu0 %v2540_v40 }
 0x109   :  { %1799 = vmatpush1.bf16.msra.mxu1 %v2546_v46  ;;  %1831 = vmatpush1.bf16.msra.mxu0 %v2548_v49 }
 0x10a   :  { %1833 = vmatprep.subr.bf16.mxu1 %v2455_v7  ;;  %1865 = vmatprep.subr.bf16.mxu0 %v2457_v8 }
 0x1bf   :  { %v276_v6 = vpop.f32.mrb[0].mxu1  ;;  %v347_v9 = vpop.f32.mrb[2].mxu0 }
 0x1c0   :  { %v277_v11 = vadd.f32 %v276_v6, %v2594_v63  ;;  %v278_v14 = vpop.f32.mrb[1].mxu1  ;;  %v349_v18 = vpop.f32.mrb[3].mxu0  ;;  %v348_v29 = vadd.f32 %v347_v9, %v2599_v13 }
 0x1c1   :  { %v279_v23 = vadd.f32 %v278_v14, %v2596_v5  ;;  %v350_v32 = vadd.f32 %v349_v18, %v2603_v31 }
 0x1c2   :  { %v352_v24 = vmul.f32 0.5, %v277_v11 }
 0x1c3   :  { %v356_v27 = vmul.f32 0.5, %v279_v23  ;;  %v361_v33 = vmul.f32 0.5, %v350_v32 }
 0x1c4   :  { %2252 = vtanh.f32 %v352_v24 }
 0x1c5   :  { %2254 = vtanh.f32 %v356_v27 }
 0x1c6   :  { %2256 = vtanh.f32 %v348_v29 }
 0x1c7   :  { %2258 = vtanh.f32 %v361_v33 }
 0x1ce   :  { %v2253_v35 = vpop.eup %2252 }
 0x1cf   :  { %v2255_v41 = vpop.eup %2254  ;;  %v354_v44 = vadd.f32 1.0, %v2253_v35 }
 0x1d0   :  { %v358_v45 = vadd.f32 1.0, %v2255_v41  ;;  %v2257_v50 = vpop.eup %2256 }
 0x1d1   :  { %v355_v48 = vmul.f32 0.5, %v354_v44  ;;  %v2259_v58 = vpop.eup %2258 }
 0x1d2   :  { %v359_v51 = vmul.f32 0.5, %v358_v45  ;;  %v363_v60 = vadd.f32 1.0, %v2259_v58 }
 0x1d3   :  { %v366_v52 = vmul.f32 %v2257_v50, %v355_v48 }
 0x1d4   :  { %v365_v56 = vmul.f32 0.0, %v359_v51  ;;  %v364_v61 = vmul.f32 0.5, %v363_v60 }
 0x1d6   :  { %v2606_v57 = vadd.f32 %v366_v52, %v365_v56 }
 0x1d8   :  { %2260 = vtanh.f32 %v2606_v57 }
 0x1e2   :  { %v2261_v62 = vpop.eup %2260 }
 0x1e3   :  { %v369_v1 = vmul.f32 %v2261_v62, %v364_v61 }
 0x1e5   :  { %435 = vmatmul.mubr.f32.vlgmr.msra.gmra.mrb[2].mxu1 %v369_v1  ;;  %506 = vmatmul.mubr.f32.vlgmr.msra.gmra.mrb[4].mxu0 %v369_v1 }
 0x1e6   :  { %1835 = vmatpush1.bf16.msra.mxu1 %v2459_v12  ;;  %1867 = vmatpush1.bf16.msra.mxu0 %v2464_v16 }
 0x1e7   :  { %1837 = vmatprep.subr.bf16.mxu1 %v2466_v17  ;;  %1869 = vmatprep.subr.bf16.mxu0 %v2469_v21 }
 0x1e8   :  { %600 = vmatprep.mubr.f32.mxu1 %v2383_v0  ;;  %671 = vmatprep.mubr.f32.mxu0 %v2383_v0 }
 0x1ea   :  { %1839 = vmatpush1.bf16.msra.mxu1 %v2473_v25  ;;  %1871 = vmatpush1.bf16.msra.mxu0 %v2475_v26 }
 0x1eb   :  { %1841 = vmatprep.subr.bf16.mxu1 %v2478_v30  ;;  %1873 = vmatprep.subr.bf16.mxu0 %v2480_v34 }
 0x1ee   :  { %1843 = vmatpush1.bf16.msra.mxu1 %v2483_v38  ;;  %1875 = vmatpush1.bf16.msra.mxu0 %v2487_v42 }
 0x1ef   :  { %1845 = vmatprep.subr.bf16.mxu1 %v2489_v43  ;;  %1877 = vmatprep.subr.bf16.mxu0 %v2492_v47 }
 0x1f2   :  { %1847 = vmatpush1.bf16.msra.mxu1 %v2495_v53  ;;  %1879 = vmatpush1.bf16.msra.mxu0 %v2499_v54 }
 0x1f3   :  { %1849 = vmatprep.subr.bf16.mxu1 %v2501_v55  ;;  %1881 = vmatprep.subr.bf16.mxu0 %v2504_v59 }
 0x1f6   :  { %1851 = vmatpush1.bf16.msra.mxu1 %v2507_v2  ;;  %1883 = vmatpush1.bf16.msra.mxu0 %v2511_v3 }
 0x1f7   :  { %1853 = vmatprep.subr.bf16.mxu1 %v2513_v4  ;;  %1885 = vmatprep.subr.bf16.mxu0 %v2516_v10 }
 0x1fa   :  { %1855 = vmatpush1.bf16.msra.mxu1 %v2519_v19  ;;  %1887 = vmatpush1.bf16.msra.mxu0 %v2523_v20 }
 0x1fb   :  { %1857 = vmatprep.subr.bf16.mxu1 %v2525_v22  ;;  %1889 = vmatprep.subr.bf16.mxu0 %v2528_v28 }
 0x1fe   :  { %1859 = vmatpush1.bf16.msra.mxu1 %v2531_v36  ;;  %1891 = vmatpush1.bf16.msra.mxu0 %v2535_v37 }
 0x1ff   :  { %1861 = vmatprep.subr.bf16.mxu1 %v2537_v39  ;;  %1893 = vmatprep.subr.bf16.mxu0 %v2540_v40 }
 0x202   :  { %1863 = vmatpush1.bf16.msra.mxu1 %v2546_v46  ;;  %1895 = vmatpush1.bf16.msra.mxu0 %v2548_v49 }
 0x203   :  { %1897 = vmatprep.subr.bf16.mxu1 %v2455_v7  ;;  %1929 = vmatprep.subr.bf16.mxu0 %v2457_v8 }
 0x2b8   :  { %v436_v6 = vpop.f32.mrb[2].mxu1  ;;  %v507_v9 = vpop.f32.mrb[4].mxu0 }
 0x2b9   :  { %v437_v11 = vadd.f32 %v436_v6, %v2594_v63  ;;  %v438_v14 = vpop.f32.mrb[3].mxu1  ;;  %v509_v15 = vpop.f32.mrb[5].mxu0  ;;  %v508_v29 = vadd.f32 %v507_v9, %v2599_v13 }
 0x2ba   :  { %v439_v18 = vadd.f32 %v438_v14, %v2596_v5  ;;  %v510_v23 = vadd.f32 %v509_v15, %v2603_v31 }
 0x2bb   :  { %v518_v24 = vmul.f32 0.5, %v437_v11 }
 0x2bc   :  { %v522_v27 = vmul.f32 0.5, %v439_v18  ;;  %513 = vrot.lane.b32.xlu0 %v510_v23, %s2385_s4  ;;  %v527_v32 = vmul.f32 0.5, %v510_v23 }
 0x2bd   :  { %2262 = vtanh.f32 %v518_v24 }
 0x2be   :  { %2264 = vtanh.f32 %v522_v27 }
 0x2bf   :  { %2266 = vtanh.f32 %v508_v29 }
 0x2c0   :  { %2268 = vtanh.f32 %v527_v32 }
 0x2c7   :  { %v2263_v33 = vpop.eup %2262 }
 0x2c8   :  { %v2265_v35 = vpop.eup %2264  ;;  %v520_v41 = vadd.f32 1.0, %v2263_v33 }
 0x2c9   :  { %v524_v44 = vadd.f32 1.0, %v2265_v35  ;;  %v2267_v48 = vpop.eup %2266 }
 0x2ca   :  { %v521_v45 = vmul.f32 0.5, %v520_v41  ;;  %v2269_v58 = vpop.eup %2268 }
 0x2cb   :  { %v525_v50 = vmul.f32 0.5, %v524_v44  ;;  %v529_v60 = vadd.f32 1.0, %v2269_v58 }
 0x2cc   :  { %v532_v51 = vmul.f32 %v2267_v48, %v521_v45 }
 0x2cd   :  { %v531_v52 = vmul.f32 %v525_v50, %v2606_v57  ;;  %v530_v61 = vmul.f32 0.5, %v529_v60 }
 0x2cf   :  { %v2648_v56 = vadd.f32 %v532_v51, %v531_v52 }
 0x2d1   :  { %2270 = vtanh.f32 %v2648_v56 }
 0x2db   :  { %v2271_v62 = vpop.eup %2270 }
 0x2dc   :  { %v535_v1 = vmul.f32 %v2271_v62, %v530_v61 }
 0x2de   :  { %601 = vmatmul.mubr.f32.vlgmr.msra.gmra.mrb[4].mxu1 %v535_v1  ;;  %672 = vmatmul.mubr.f32.vlgmr.msra.gmra.mrb[6].mxu0 %v535_v1 }
 0x2df   :  { %1899 = vmatpush1.bf16.msra.mxu1 %v2459_v12  ;;  %1931 = vmatpush1.bf16.msra.mxu0 %v2464_v16 }
 0x2e0   :  { %1901 = vmatprep.subr.bf16.mxu1 %v2466_v17  ;;  %1933 = vmatprep.subr.bf16.mxu0 %v2469_v21 }
 0x2e1   :  { %766 = vmatprep.mubr.f32.mxu1 %v2383_v0  ;;  %837 = vmatprep.mubr.f32.mxu0 %v2383_v0 }
 0x2e3   :  { %1903 = vmatpush1.bf16.msra.mxu1 %v2473_v25  ;;  %1935 = vmatpush1.bf16.msra.mxu0 %v2475_v26 }
 0x2e4   :  { %1905 = vmatprep.subr.bf16.mxu1 %v2478_v30  ;;  %1937 = vmatprep.subr.bf16.mxu0 %v2480_v34 }
 0x2e7   :  { %1907 = vmatpush1.bf16.msra.mxu1 %v2483_v38  ;;  %1939 = vmatpush1.bf16.msra.mxu0 %v2487_v42 }
 0x2e8   :  { %1909 = vmatprep.subr.bf16.mxu1 %v2489_v43  ;;  %1941 = vmatprep.subr.bf16.mxu0 %v2492_v47 }
 0x2eb   :  { %1911 = vmatpush1.bf16.msra.mxu1 %v2495_v53  ;;  %1943 = vmatpush1.bf16.msra.mxu0 %v2499_v54 }
 0x2ec   :  { %1913 = vmatprep.subr.bf16.mxu1 %v2501_v55  ;;  %1945 = vmatprep.subr.bf16.mxu0 %v2504_v59 }
 0x2ef   :  { %1915 = vmatpush1.bf16.msra.mxu1 %v2507_v2  ;;  %1947 = vmatpush1.bf16.msra.mxu0 %v2511_v3 }
 0x2f0   :  { %1917 = vmatprep.subr.bf16.mxu1 %v2513_v4  ;;  %1949 = vmatprep.subr.bf16.mxu0 %v2516_v10 }
 0x2f3   :  { %1919 = vmatpush1.bf16.msra.mxu1 %v2519_v19  ;;  %1951 = vmatpush1.bf16.msra.mxu0 %v2523_v20 }
 0x2f4   :  { %1921 = vmatprep.subr.bf16.mxu1 %v2525_v22  ;;  %1953 = vmatprep.subr.bf16.mxu0 %v2528_v28 }
 0x2f7   :  { %1923 = vmatpush1.bf16.msra.mxu1 %v2531_v36  ;;  %1955 = vmatpush1.bf16.msra.mxu0 %v2535_v37 }
 0x2f8   :  { %1925 = vmatprep.subr.bf16.mxu1 %v2537_v39  ;;  %1957 = vmatprep.subr.bf16.mxu0 %v2540_v40 }
 0x2fb   :  { %1927 = vmatpush1.bf16.msra.mxu1 %v2546_v46  ;;  %1959 = vmatpush1.bf16.msra.mxu0 %v2548_v49 }
 0x2fc   :  { %1961 = vmatprep.subr.bf16.mxu1 %v2455_v7  ;;  %1993 = vmatprep.subr.bf16.mxu0 %v2457_v8 }
 0x32e   :  { %v514_v57 = vpop.permute.xlu0 %513 }
 0x32f   :  { %517 = vst.msk [vmem:[#allocation5] sm:$0xff] %vm516_vm2, %v514_v57 }
 0x3b1   :  { %v602_v6 = vpop.f32.mrb[4].mxu1  ;;  %v673_v9 = vpop.f32.mrb[6].mxu0 }
 0x3b2   :  { %v603_v11 = vadd.f32 %v602_v6, %v2594_v63  ;;  %v604_v14 = vpop.f32.mrb[5].mxu1  ;;  %v675_v15 = vpop.f32.mrb[7].mxu0  ;;  %v674_v29 = vadd.f32 %v673_v9, %v2599_v13 }
 0x3b3   :  { %v605_v18 = vadd.f32 %v604_v14, %v2596_v5  ;;  %v676_v23 = vadd.f32 %v675_v15, %v2603_v31 }
 0x3b4   :  { %v684_v24 = vmul.f32 0.5, %v603_v11 }
 0x3b5   :  { %v688_v27 = vmul.f32 0.5, %v605_v18  ;;  %679 = vrot.lane.b32.xlu0 %v676_v23, %s2386_s19  ;;  %v693_v32 = vmul.f32 0.5, %v676_v23 }
 0x3b6   :  { %2272 = vtanh.f32 %v684_v24 }
 0x3b7   :  { %2274 = vtanh.f32 %v688_v27 }
 0x3b8   :  { %2276 = vtanh.f32 %v674_v29 }
 0x3b9   :  { %2278 = vtanh.f32 %v693_v32 }
 0x3c0   :  { %v2273_v33 = vpop.eup %2272 }
 0x3c1   :  { %v2275_v35 = vpop.eup %2274  ;;  %v686_v41 = vadd.f32 1.0, %v2273_v33 }
 0x3c2   :  { %v690_v44 = vadd.f32 1.0, %v2275_v35  ;;  %v2277_v48 = vpop.eup %2276 }
 0x3c3   :  { %v687_v45 = vmul.f32 0.5, %v686_v41  ;;  %v2279_v60 = vpop.eup %2278 }
 0x3c4   :  { %v691_v50 = vmul.f32 0.5, %v690_v44  ;;  %v695_v61 = vadd.f32 1.0, %v2279_v60 }
 0x3c5   :  { %v698_v51 = vmul.f32 %v2277_v48, %v687_v45 }
 0x3c6   :  { %v697_v52 = vmul.f32 %v691_v50, %v2648_v56  ;;  %v696_v62 = vmul.f32 0.5, %v695_v61 }
 0x3c8   :  { %v2691_v58 = vadd.f32 %v698_v51, %v697_v52 }
 0x3ca   :  { %2280 = vtanh.f32 %v2691_v58 }
 0x3d4   :  { %v2281_v1 = vpop.eup %2280 }
 0x3d5   :  { %v701_v57 = vmul.f32 %v2281_v1, %v696_v62 }
 0x3d7   :  { %767 = vmatmul.mubr.f32.vlgmr.msra.gmra.mrb[6].mxu1 %v701_v57  ;;  %838 = vmatmul.mubr.f32.vlgmr.msra.gmra.mrb[8].mxu0 %v701_v57 }
 0x3d8   :  { %1963 = vmatpush1.bf16.msra.mxu1 %v2459_v12  ;;  %1995 = vmatpush1.bf16.msra.mxu0 %v2464_v16 }
 0x3d9   :  { %1965 = vmatprep.subr.bf16.mxu1 %v2466_v17  ;;  %1997 = vmatprep.subr.bf16.mxu0 %v2469_v21 }
 0x3da   :  { %928 = vmatprep.mubr.f32.mxu1 %v2383_v0  ;;  %999 = vmatprep.mubr.f32.mxu0 %v2383_v0 }
 0x3dc   :  { %1967 = vmatpush1.bf16.msra.mxu1 %v2473_v25  ;;  %1999 = vmatpush1.bf16.msra.mxu0 %v2475_v26 }
 0x3dd   :  { %1969 = vmatprep.subr.bf16.mxu1 %v2478_v30  ;;  %2001 = vmatprep.subr.bf16.mxu0 %v2480_v34 }
 0x3e0   :  { %1971 = vmatpush1.bf16.msra.mxu1 %v2483_v38  ;;  %2003 = vmatpush1.bf16.msra.mxu0 %v2487_v42 }
 0x3e1   :  { %1973 = vmatprep.subr.bf16.mxu1 %v2489_v43  ;;  %2005 = vmatprep.subr.bf16.mxu0 %v2492_v47 }
 0x3e4   :  { %1975 = vmatpush1.bf16.msra.mxu1 %v2495_v53  ;;  %2007 = vmatpush1.bf16.msra.mxu0 %v2499_v54 }
 0x3e5   :  { %1977 = vmatprep.subr.bf16.mxu1 %v2501_v55  ;;  %2009 = vmatprep.subr.bf16.mxu0 %v2504_v59 }
 0x3e8   :  { %1979 = vmatpush1.bf16.msra.mxu1 %v2507_v2  ;;  %2011 = vmatpush1.bf16.msra.mxu0 %v2511_v3 }
 0x3e9   :  { %1981 = vmatprep.subr.bf16.mxu1 %v2513_v4  ;;  %2013 = vmatprep.subr.bf16.mxu0 %v2516_v10 }
 0x3ec   :  { %1983 = vmatpush1.bf16.msra.mxu1 %v2519_v19  ;;  %2015 = vmatpush1.bf16.msra.mxu0 %v2523_v20 }
 0x3ed   :  { %1985 = vmatprep.subr.bf16.mxu1 %v2525_v22  ;;  %2017 = vmatprep.subr.bf16.mxu0 %v2528_v28 }
 0x3f0   :  { %1987 = vmatpush1.bf16.msra.mxu1 %v2531_v36  ;;  %2019 = vmatpush1.bf16.msra.mxu0 %v2535_v37 }
 0x3f1   :  { %1989 = vmatprep.subr.bf16.mxu1 %v2537_v39  ;;  %2021 = vmatprep.subr.bf16.mxu0 %v2540_v40 }
 0x3f4   :  { %1991 = vmatpush1.bf16.msra.mxu1 %v2546_v46  ;;  %2023 = vmatpush1.bf16.msra.mxu0 %v2548_v49 }
 0x3f5   :  { %2025 = vmatprep.subr.bf16.mxu1 %v2455_v7  ;;  %2057 = vmatprep.subr.bf16.mxu0 %v2457_v8 }
 0x427   :  { %v680_v56 = vpop.permute.xlu0 %679 }
 0x428   :  { %683 = vst.msk [vmem:[#allocation5] sm:$0xff] %vm682_vm3, %v680_v56 }
 0x4aa   :  { %v768_v6 = vpop.f32.mrb[6].mxu1  ;;  %v839_v9 = vpop.f32.mrb[8].mxu0 }
 0x4ab   :  { %v769_v11 = vadd.f32 %v768_v6, %v2594_v63  ;;  %v770_v14 = vpop.f32.mrb[7].mxu1  ;;  %v841_v15 = vpop.f32.mrb[9].mxu0  ;;  %v840_v29 = vadd.f32 %v839_v9, %v2599_v13 }
 0x4ac   :  { %v771_v18 = vadd.f32 %v770_v14, %v2596_v5  ;;  %v842_v23 = vadd.f32 %v841_v15, %v2603_v31 }
 0x4ad   :  { %v846_v24 = vmul.f32 0.5, %v769_v11 }
 0x4ae   :  { %v850_v27 = vmul.f32 0.5, %v771_v18  ;;  %845 = vst.msk [vmem:[#allocation5] sm:$0xff] %vm844_vm4, %v842_v23  ;;  %v855_v32 = vmul.f32 0.5, %v842_v23 }
 0x4af   :  { %2282 = vtanh.f32 %v846_v24 }
 0x4b0   :  { %2284 = vtanh.f32 %v850_v27 }
 0x4b1   :  { %2286 = vtanh.f32 %v840_v29 }
 0x4b2   :  { %2288 = vtanh.f32 %v855_v32 }
 0x4b9   :  { %v2283_v33 = vpop.eup %2282 }
 0x4ba   :  { %v2285_v35 = vpop.eup %2284  ;;  %v848_v41 = vadd.f32 1.0, %v2283_v33 }
 0x4bb   :  { %v852_v44 = vadd.f32 1.0, %v2285_v35  ;;  %v2287_v48 = vpop.eup %2286 }
 0x4bc   :  { %v849_v45 = vmul.f32 0.5, %v848_v41  ;;  %v2289_v61 = vpop.eup %2288 }
 0x4bd   :  { %v853_v50 = vmul.f32 0.5, %v852_v44  ;;  %v857_v62 = vadd.f32 1.0, %v2289_v61 }
 0x4be   :  { %v860_v51 = vmul.f32 %v2287_v48, %v849_v45 }
 0x4bf   :  { %v859_v52 = vmul.f32 %v853_v50, %v2691_v58  ;;  %v858_v1 = vmul.f32 0.5, %v857_v62 }
 0x4c1   :  { %v2733_v60 = vadd.f32 %v860_v51, %v859_v52 }
 0x4c3   :  { %2290 = vtanh.f32 %v2733_v60 }
 0x4cd   :  { %v2291_v57 = vpop.eup %2290 }
 0x4ce   :  { %v863_v56 = vmul.f32 %v2291_v57, %v858_v1 }
 0x4d0   :  { %929 = vmatmul.mubr.f32.vlgmr.msra.gmra.mrb[8].mxu1 %v863_v56  ;;  %1000 = vmatmul.mubr.f32.vlgmr.msra.gmra.mrb[10].mxu0 %v863_v56 }
 0x4d1   :  { %2027 = vmatpush1.bf16.msra.mxu1 %v2459_v12  ;;  %2059 = vmatpush1.bf16.msra.mxu0 %v2464_v16 }
 0x4d2   :  { %2029 = vmatprep.subr.bf16.mxu1 %v2466_v17  ;;  %2061 = vmatprep.subr.bf16.mxu0 %v2469_v21 }
 0x4d3   :  { %1094 = vmatprep.mubr.f32.mxu1 %v2383_v0  ;;  %1165 = vmatprep.mubr.f32.mxu0 %v2383_v0 }
 0x4d5   :  { %2031 = vmatpush1.bf16.msra.mxu1 %v2473_v25  ;;  %2063 = vmatpush1.bf16.msra.mxu0 %v2475_v26 }
 0x4d6   :  { %2033 = vmatprep.subr.bf16.mxu1 %v2478_v30  ;;  %2065 = vmatprep.subr.bf16.mxu0 %v2480_v34 }
 0x4d9   :  { %2035 = vmatpush1.bf16.msra.mxu1 %v2483_v38  ;;  %2067 = vmatpush1.bf16.msra.mxu0 %v2487_v42 }
 0x4da   :  { %2037 = vmatprep.subr.bf16.mxu1 %v2489_v43  ;;  %2069 = vmatprep.subr.bf16.mxu0 %v2492_v47 }
 0x4dd   :  { %2039 = vmatpush1.bf16.msra.mxu1 %v2495_v53  ;;  %2071 = vmatpush1.bf16.msra.mxu0 %v2499_v54 }
 0x4de   :  { %2041 = vmatprep.subr.bf16.mxu1 %v2501_v55  ;;  %2073 = vmatprep.subr.bf16.mxu0 %v2504_v59 }
 0x4e1   :  { %2043 = vmatpush1.bf16.msra.mxu1 %v2507_v2  ;;  %2075 = vmatpush1.bf16.msra.mxu0 %v2511_v3 }
 0x4e2   :  { %2045 = vmatprep.subr.bf16.mxu1 %v2513_v4  ;;  %2077 = vmatprep.subr.bf16.mxu0 %v2516_v10 }
 0x4e5   :  { %2047 = vmatpush1.bf16.msra.mxu1 %v2519_v19  ;;  %2079 = vmatpush1.bf16.msra.mxu0 %v2523_v20 }
 0x4e6   :  { %2049 = vmatprep.subr.bf16.mxu1 %v2525_v22  ;;  %2081 = vmatprep.subr.bf16.mxu0 %v2528_v28 }
 0x4e9   :  { %2051 = vmatpush1.bf16.msra.mxu1 %v2531_v36  ;;  %2083 = vmatpush1.bf16.msra.mxu0 %v2535_v37 }
 0x4ea   :  { %2053 = vmatprep.subr.bf16.mxu1 %v2537_v39  ;;  %2085 = vmatprep.subr.bf16.mxu0 %v2540_v40 }
 0x4ed   :  { %2055 = vmatpush1.bf16.msra.mxu1 %v2546_v46  ;;  %2087 = vmatpush1.bf16.msra.mxu0 %v2548_v49 }
 0x4ee   :  { %2089 = vmatprep.subr.bf16.mxu1 %v2455_v7  ;;  %2121 = vmatprep.subr.bf16.mxu0 %v2457_v8 }
 0x5a3   :  { %v930_v58 = vpop.f32.mrb[8].mxu1  ;;  %v1001_v6 = vpop.f32.mrb[10].mxu0 }
 0x5a4   :  { %v931_v9 = vadd.f32 %v930_v58, %v2594_v63  ;;  %v932_v11 = vpop.f32.mrb[9].mxu1  ;;  %v1003_v14 = vpop.f32.mrb[11].mxu0  ;;  %v1002_v27 = vadd.f32 %v1001_v6, %v2599_v13 }
 0x5a5   :  { %v933_v15 = vadd.f32 %v932_v11, %v2596_v5  ;;  %v1004_v18 = vadd.f32 %v1003_v14, %v2603_v31 }
 0x5a6   :  { %v1012_v23 = vmul.f32 0.5, %v931_v9 }
 0x5a7   :  { %v1016_v24 = vmul.f32 0.5, %v933_v15  ;;  %1007 = vrot.lane.b32.xlu1 %v1004_v18, %s2387_s20  ;;  %v1021_v29 = vmul.f32 0.5, %v1004_v18 }
 0x5a8   :  { %2292 = vtanh.f32 %v1012_v23 }
 0x5a9   :  { %2294 = vtanh.f32 %v1016_v24 }
 0x5aa   :  { %2296 = vtanh.f32 %v1002_v27 }
 0x5ab   :  { %2298 = vtanh.f32 %v1021_v29 }
 0x5b2   :  { %v2293_v32 = vpop.eup %2292 }
 0x5b3   :  { %v2295_v33 = vpop.eup %2294  ;;  %v1014_v35 = vadd.f32 1.0, %v2293_v32 }
 0x5b4   :  { %v1018_v41 = vadd.f32 1.0, %v2295_v33  ;;  %v2297_v45 = vpop.eup %2296 }
 0x5b5   :  { %v1015_v44 = vmul.f32 0.5, %v1014_v35  ;;  %v2299_v61 = vpop.eup %2298 }
 0x5b6   :  { %v1019_v48 = vmul.f32 0.5, %v1018_v41  ;;  %v1023_v62 = vadd.f32 1.0, %v2299_v61 }
 0x5b7   :  { %v1026_v50 = vmul.f32 %v2297_v45, %v1015_v44 }
 0x5b8   :  { %v1025_v51 = vmul.f32 %v1019_v48, %v2733_v60  ;;  %v1024_v1 = vmul.f32 0.5, %v1023_v62 }
 0x5ba   :  { %v2775_v52 = vadd.f32 %v1026_v50, %v1025_v51 }
 0x5bc   :  { %2300 = vtanh.f32 %v2775_v52 }
 0x5c6   :  { %v2301_v57 = vpop.eup %2300 }
 0x5c7   :  { %v1029_v56 = vmul.f32 %v2301_v57, %v1024_v1 }
 0x5c9   :  { %1095 = vmatmul.mubr.f32.vlgmr.msra.gmra.mrb[10].mxu1 %v1029_v56  ;;  %1166 = vmatmul.mubr.f32.vlgmr.msra.gmra.mrb[12].mxu0 %v1029_v56  ;;  %v2389_v56 = vmov 0.0|0.0  }
 0x5ca   :  { %2091 = vmatpush1.bf16.msra.mxu1 %v2459_v12  ;;  %2123 = vmatpush1.bf16.msra.mxu0 %v2464_v16 }
 0x5cb   :  { %2093 = vmatprep.subr.bf16.mxu1 %v2466_v17  ;;  %2125 = vmatprep.subr.bf16.mxu0 %v2469_v21 }
 0x5cc   :  { %1260 = vmatprep.mubr.f32.mxu1 %v2383_v0  ;;  %1331 = vmatprep.mubr.f32.mxu0 %v2383_v0 }
 0x5ce   :  { %2095 = vmatpush1.bf16.msra.mxu1 %v2473_v25  ;;  %2127 = vmatpush1.bf16.msra.mxu0 %v2475_v26 }
 0x5cf   :  { %2097 = vmatprep.subr.bf16.mxu1 %v2478_v30  ;;  %2129 = vmatprep.subr.bf16.mxu0 %v2480_v34 }
 0x5d2   :  { %2099 = vmatpush1.bf16.msra.mxu1 %v2483_v38  ;;  %2131 = vmatpush1.bf16.msra.mxu0 %v2487_v42 }
 0x5d3   :  { %2101 = vmatprep.subr.bf16.mxu1 %v2489_v43  ;;  %2133 = vmatprep.subr.bf16.mxu0 %v2492_v47 }
 0x5d6   :  { %2103 = vmatpush1.bf16.msra.mxu1 %v2495_v53  ;;  %2135 = vmatpush1.bf16.msra.mxu0 %v2499_v54 }
 0x5d7   :  { %2105 = vmatprep.subr.bf16.mxu1 %v2501_v55  ;;  %2137 = vmatprep.subr.bf16.mxu0 %v2504_v59 }
 0x5da   :  { %2107 = vmatpush1.bf16.msra.mxu1 %v2507_v2  ;;  %2139 = vmatpush1.bf16.msra.mxu0 %v2511_v3 }
 0x5db   :  { %2109 = vmatprep.subr.bf16.mxu1 %v2513_v4  ;;  %2141 = vmatprep.subr.bf16.mxu0 %v2516_v10 }
 0x5de   :  { %2111 = vmatpush1.bf16.msra.mxu1 %v2519_v19  ;;  %2143 = vmatpush1.bf16.msra.mxu0 %v2523_v20 }
 0x5df   :  { %2113 = vmatprep.subr.bf16.mxu1 %v2525_v22  ;;  %2145 = vmatprep.subr.bf16.mxu0 %v2528_v28 }
 0x5e2   :  { %2115 = vmatpush1.bf16.msra.mxu1 %v2531_v36  ;;  %2147 = vmatpush1.bf16.msra.mxu0 %v2535_v37 }
 0x5e3   :  { %2117 = vmatprep.subr.bf16.mxu1 %v2537_v39  ;;  %2149 = vmatprep.subr.bf16.mxu0 %v2540_v40 }
 0x5e6   :  { %2119 = vmatpush1.bf16.msra.mxu1 %v2546_v46  ;;  %2151 = vmatpush1.bf16.msra.mxu0 %v2548_v49 }
 0x5e7   :  { %2153 = vmatprep.subr.bf16.mxu1 %v2455_v7  ;;  %2185 = vmatprep.subr.bf16.mxu0 %v2457_v8 }
 0x619   :  { %v1008_v60 = vpop.permute.xlu1 %1007 }
 0x61a   :  { %1011 = vst.msk [vmem:[#allocation5] sm:$0xff] %vm1010_vm5, %v1008_v60  ;;  %v1531_v60 = vld [vmem:[%s2937_s5 + $0x18] sm:$0xff] }
 0x69c   :  { %v1096_v58 = vpop.f32.mrb[10].mxu1  ;;  %v1167_v6 = vpop.f32.mrb[12].mxu0 }
 0x69d   :  { %v1097_v9 = vadd.f32 %v1096_v58, %v2594_v63  ;;  %v1098_v11 = vpop.f32.mrb[11].mxu1  ;;  %v1169_v14 = vpop.f32.mrb[13].mxu0  ;;  %v1168_v7 = vadd.f32 %v1167_v6, %v2599_v13  ;;  %v1532_v6 = vld [vmem:[%s2937_s5 + $0x20] sm:$0xff] }
 0x69e   :  { %v1099_v15 = vadd.f32 %v1098_v11, %v2596_v5  ;;  %v1170_v18 = vadd.f32 %v1169_v14, %v2603_v31  ;;  %v1534_v14 = vld [vmem:[%s2937_s5 + $0x30] sm:$0xff] }
 0x69f   :  { %v1178_v23 = vmul.f32 0.5, %v1097_v9  ;;  %v1533_v9 = vld [vmem:[%s2937_s5 + $0x28] sm:$0xff] }
 0x6a0   :  { %v1182_v24 = vmul.f32 0.5, %v1099_v15  ;;  %1173 = vrot.lane.b32.xlu1 %v1170_v18, %s2382_s12  ;;  %v1187_v8 = vmul.f32 0.5, %v1170_v18  ;;  %v2223_v11 = vpack.c.bf16 %v1533_v9, %v1532_v6  ;;  %v1535_v15 = vld [vmem:[%s2937_s5 + $0x38] sm:$0xff] }
 0x6a1   :  { %2302 = vtanh.f32 %v1178_v23  ;;  %v2226_v18 = vpack.c.bf16 %v1535_v15, %v1534_v14  ;;  %v1536_v23 = vld [vmem:[%s2937_s5 + $0x40] sm:$0xff] }
 0x6a2   :  { %2304 = vtanh.f32 %v1182_v24  ;;  %v1537_v24 = vld [vmem:[%s2937_s5 + $0x48] sm:$0xff] }
 0x6a3   :  { %2306 = vtanh.f32 %v1168_v7  ;;  %v2229_v7 = vpack.c.bf16 %v1537_v24, %v1536_v23 }
 0x6a4   :  { %2308 = vtanh.f32 %v1187_v8  ;;  %v1538_v8 = vld [vmem:[%s2937_s5 + $0x50] sm:$0xff] }
 0x6ab   :  { %v2303_v27 = vpop.eup %2302 }
 0x6ac   :  { %v2305_v29 = vpop.eup %2304  ;;  %v1180_v32 = vadd.f32 1.0, %v2303_v27  ;;  %v1539_v27 = vld [vmem:[%s2937_s5 + $0x58] sm:$0xff] }
 0x6ad   :  { %v1184_v33 = vadd.f32 1.0, %v2305_v29  ;;  %v2307_v41 = vpop.eup %2306  ;;  %v1540_v29 = vld [vmem:[%s2937_s5 + $0x60] sm:$0xff] }
 0x6ae   :  { %v1181_v35 = vmul.f32 0.5, %v1180_v32  ;;  %v2309_v51 = vpop.eup %2308  ;;  %v2232_v32 = vpack.c.bf16 %v1539_v27, %v1538_v8 }
 0x6af   :  { %v1185_v44 = vmul.f32 0.5, %v1184_v33  ;;  %v1189_v61 = vadd.f32 1.0, %v2309_v51  ;;  %v1541_v33 = vld [vmem:[%s2937_s5 + $0x68] sm:$0xff] }
 0x6b0   :  { %v1192_v45 = vmul.f32 %v2307_v41, %v1181_v35  ;;  %v2235_v35 = vpack.c.bf16 %v1541_v33, %v1540_v29  ;;  %v1542_v41 = vld [vmem:[%s2937_s5 + $0x70] sm:$0xff] }
 0x6b1   :  { %v1191_v48 = vmul.f32 %v1185_v44, %v2775_v52  ;;  %v1190_v62 = vmul.f32 0.5, %v1189_v61  ;;  %v1543_v44 = vld [vmem:[%s2937_s5 + $0x78] sm:$0xff] }
 0x6b3   :  { %v2818_v50 = vadd.f32 %v1192_v45, %v1191_v48  ;;  %v2238_v45 = vpack.c.bf16 %v1543_v44, %v1542_v41 }
 0x6b5   :  { %2310 = vtanh.f32 %v2818_v50 }
 0x6bf   :  { %v2311_v1 = vpop.eup %2310 }
 0x6c0   :  { %v1195_v57 = vmul.f32 %v2311_v1, %v1190_v62 }
 0x6c2   :  { %1261 = vmatmul.mubr.f32.vlgmr.msra.gmra.mrb[12].mxu1 %v1195_v57  ;;  %1332 = vmatmul.mubr.f32.vlgmr.msra.gmra.mrb[14].mxu0 %v1195_v57 }
 0x6c3   :  { %2155 = vmatpush1.bf16.msra.mxu1 %v2459_v12  ;;  %2187 = vmatpush1.bf16.msra.mxu0 %v2464_v16 }
 0x6c4   :  { %2157 = vmatprep.subr.bf16.mxu1 %v2466_v17  ;;  %2189 = vmatprep.subr.bf16.mxu0 %v2469_v21 }
 0x6c5   :  { %1426 = vmatprep.mubr.f32.mxu1 %v2383_v0  ;;  %1497 = vmatprep.mubr.f32.mxu0 %v2383_v0 }
 0x6c7   :  { %2159 = vmatpush1.bf16.msra.mxu1 %v2473_v25  ;;  %2191 = vmatpush1.bf16.msra.mxu0 %v2475_v26 }
 0x6c8   :  { %2161 = vmatprep.subr.bf16.mxu1 %v2478_v30  ;;  %2193 = vmatprep.subr.bf16.mxu0 %v2480_v34 }
 0x6cb   :  { %2163 = vmatpush1.bf16.msra.mxu1 %v2483_v38  ;;  %2195 = vmatpush1.bf16.msra.mxu0 %v2487_v42 }
 0x6cc   :  { %2165 = vmatprep.subr.bf16.mxu1 %v2489_v43  ;;  %2197 = vmatprep.subr.bf16.mxu0 %v2492_v47 }
 0x6cf   :  { %2167 = vmatpush1.bf16.msra.mxu1 %v2495_v53  ;;  %2199 = vmatpush1.bf16.msra.mxu0 %v2499_v54 }
 0x6d0   :  { %2169 = vmatprep.subr.bf16.mxu1 %v2501_v55  ;;  %2201 = vmatprep.subr.bf16.mxu0 %v2504_v59 }
 0x6d3   :  { %2171 = vmatpush1.bf16.msra.mxu1 %v2507_v2  ;;  %2203 = vmatpush1.bf16.msra.mxu0 %v2511_v3 }
 0x6d4   :  { %2173 = vmatprep.subr.bf16.mxu1 %v2513_v4  ;;  %2205 = vmatprep.subr.bf16.mxu0 %v2516_v10 }
 0x6d7   :  { %2175 = vmatpush1.bf16.msra.mxu1 %v2519_v19  ;;  %2207 = vmatpush1.bf16.msra.mxu0 %v2523_v20 }
 0x6d8   :  { %2177 = vmatprep.subr.bf16.mxu1 %v2525_v22  ;;  %2209 = vmatprep.subr.bf16.mxu0 %v2528_v28 }
 0x6db   :  { %2179 = vmatpush1.bf16.msra.mxu1 %v2531_v36  ;;  %2211 = vmatpush1.bf16.msra.mxu0 %v2535_v37 }
 0x6dc   :  { %2181 = vmatprep.subr.bf16.mxu1 %v2537_v39  ;;  %2213 = vmatprep.subr.bf16.mxu0 %v2540_v40 }
 0x6df   :  { %2183 = vmatpush1.bf16.msra.mxu1 %v2546_v46  ;;  %2215 = vmatpush1.bf16.msra.mxu0 %v2548_v49  ;;  %v1528_v46 = vld [vmem:[%s2937_s5] sm:$0xff]  ;;  %v1529_v49 = vld [vmem:[%s2937_s5 + $0x8] sm:$0xff] }
 0x6e0   :  { %v2217_v52 = vpack.c.bf16 %v1529_v49, %v1528_v46  ;;  %2216 = vmatprep.subr.bf16.mxu1 %v2389_v56 }
 0x712   :  { %v1174_v12 = vpop.permute.xlu1 %1173 }
 0x713   :  { %1177 = vst.msk [vmem:[#allocation5] sm:$0xff] %vm1176_vm6, %v1174_v12 }
 0x795   :  { %v1262_v16 = vpop.f32.mrb[12].mxu1  ;;  %v1333_v17 = vpop.f32.mrb[14].mxu0 }
 0x796   :  { %v1263_v21 = vadd.f32 %v1262_v16, %v2594_v63  ;;  %v1264_v25 = vpop.f32.mrb[13].mxu1  ;;  %v1335_v26 = vpop.f32.mrb[15].mxu0  ;;  %v1334_v43 = vadd.f32 %v1333_v17, %v2599_v13 }
 0x797   :  { %v1265_v30 = vadd.f32 %v1264_v25, %v2596_v5  ;;  %v1336_v34 = vadd.f32 %v1335_v26, %v2603_v31 }
 0x798   :  { %v1344_v38 = vmul.f32 0.5, %v1263_v21 }
 0x799   :  { %v1348_v42 = vmul.f32 0.5, %v1265_v30  ;;  %1339 = vrot.lane.b32.xlu0 %v1336_v34, %s2388_s21  ;;  %v1353_v47 = vmul.f32 0.5, %v1336_v34 }
 0x79a   :  { %2312 = vtanh.f32 %v1344_v38 }
 0x79b   :  { %2314 = vtanh.f32 %v1348_v42 }
 0x79c   :  { %2316 = vtanh.f32 %v1334_v43 }
 0x79d   :  { %2318 = vtanh.f32 %v1353_v47 }
 0x7a4   :  { %v2313_v53 = vpop.eup %2312 }
 0x7a5   :  { %v2315_v54 = vpop.eup %2314  ;;  %v1346_v55 = vadd.f32 1.0, %v2313_v53 }
 0x7a6   :  { %v1350_v59 = vadd.f32 1.0, %v2315_v54  ;;  %v2317_v3 = vpop.eup %2316 }
 0x7a7   :  { %v1347_v2 = vmul.f32 0.5, %v1346_v55  ;;  %v2319_v22 = vpop.eup %2318 }
 0x7a8   :  { %v1351_v4 = vmul.f32 0.5, %v1350_v59  ;;  %v1355_v28 = vadd.f32 1.0, %v2319_v22 }
 0x7a9   :  { %v1358_v10 = vmul.f32 %v2317_v3, %v1347_v2  ;;  %v1644_v2 = vld [vmem:[%s2938_s6] ss:$0 sm:$0xff] }
 0x7aa   :  { %v1357_v19 = vmul.f32 %v1351_v4, %v2818_v50  ;;  %v1356_v36 = vmul.f32 0.5, %v1355_v28 }
 0x7ac   :  { %v2858_v20 = vadd.f32 %v1358_v10, %v1357_v19 }
 0x7ae   :  { %2320 = vtanh.f32 %v2858_v20 }
 0x7b8   :  { %v2321_v37 = vpop.eup %2320 }
 0x7b9   :  { %v1361_v39 = vmul.f32 %v2321_v37, %v1356_v36 }
 0x7bb   :  { %1427 = vmatmul.mubr.f32.vlgmr.msra.gmra.mrb[14].mxu1 %v1361_v39  ;;  %1498 = vmatmul.mubr.f32.vlgmr.msra.gmra.mrb[16].mxu0 %v1361_v39 }
 0x7bc   :  { %1701 = vmatprep.mubr.msk.f32.mxu1 %vm2384_vm0, %v2383_v0  ;;  %2218 = vmatpush3.bf16.msra.mxu1 %v2217_v52  ;;  %v1530_v0 = vld [vmem:[%s2937_s5 + $0x10] sm:$0xff] }
 0x7bd   :  { %2219 = vmatprep.subr.bf16.mxu1 %v2389_v56  ;;  %v2220_v58 = vpack.c.bf16 %v1531_v60, %v1530_v0 }
 0x7c0   :  { %2221 = vmatpush3.bf16.msra.mxu1 %v2220_v58 }
 0x7c1   :  { %2222 = vmatprep.subr.bf16.mxu1 %v2389_v56 }
 0x7c4   :  { %2224 = vmatpush3.bf16.msra.mxu1 %v2223_v11 }
 0x7c5   :  { %2225 = vmatprep.subr.bf16.mxu1 %v2389_v56 }
 0x7c8   :  { %2227 = vmatpush3.bf16.msra.mxu1 %v2226_v18 }
 0x7c9   :  { %2228 = vmatprep.subr.bf16.mxu1 %v2389_v56 }
 0x7cc   :  { %2230 = vmatpush3.bf16.msra.mxu1 %v2229_v7 }
 0x7cd   :  { %2231 = vmatprep.subr.bf16.mxu1 %v2389_v56 }
 0x7d0   :  { %2233 = vmatpush3.bf16.msra.mxu1 %v2232_v32 }
 0x7d1   :  { %2234 = vmatprep.subr.bf16.mxu1 %v2389_v56 }
 0x7d4   :  { %2236 = vmatpush3.bf16.msra.mxu1 %v2235_v35 }
 0x7d5   :  { %2237 = vmatprep.subr.bf16.mxu1 %v2389_v56 }
 0x7d8   :  { %2239 = vmatpush3.bf16.msra.mxu1 %v2238_v45 }
 0x80b   :  { %v1340_v40 = vpop.permute.xlu0 %1339 }
 0x80c   :  { %1343 = vst.msk [vmem:[#allocation5] sm:$0xff] %vm1342_vm7, %v1340_v40 }
 0x88e   :  { %v1428_v48 = vpop.f32.mrb[14].mxu1  ;;  %v1499_v50 = vpop.f32.mrb[16].mxu0 }
 0x88f   :  { %v1429_v51 = vadd.f32 %v1428_v48, %v2594_v63  ;;  %v1430_v61 = vpop.f32.mrb[15].mxu1  ;;  %v1501_v62 = vpop.f32.mrb[17].mxu0  ;;  %v1500_v17 = vadd.f32 %v1499_v50, %v2599_v13 }
 0x890   :  { %v1431_v1 = vadd.f32 %v1430_v61, %v2596_v5  ;;  %v1502_v57 = vadd.f32 %v1501_v62, %v2603_v31 }
 0x891   :  { %v1510_v12 = vmul.f32 0.5, %v1429_v51 }
 0x892   :  { %v1514_v16 = vmul.f32 0.5, %v1431_v1  ;;  %1505 = vrot.lane.b32.xlu1 %v1502_v57, %s2390_s27  ;;  %v1519_v21 = vmul.f32 0.5, %v1502_v57 }
 0x893   :  { %2322 = vtanh.f32 %v1510_v12 }
 0x894   :  { %2324 = vtanh.f32 %v1514_v16 }
 0x895   :  { %2326 = vtanh.f32 %v1500_v17 }
 0x896   :  { %2328 = vtanh.f32 %v1519_v21 }
 0x89d   :  { %v2323_v25 = vpop.eup %2322 }
 0x89e   :  { %v2325_v26 = vpop.eup %2324  ;;  %v1512_v30 = vadd.f32 1.0, %v2323_v25 }
 0x89f   :  { %v1516_v63 = vadd.f32 1.0, %v2325_v26  ;;  %v2327_v38 = vpop.eup %2326 }
 0x8a0   :  { %v1513_v34 = vmul.f32 0.5, %v1512_v30  ;;  %v2329_v47 = vpop.eup %2328 }
 0x8a1   :  { %v1517_v5 = vmul.f32 0.5, %v1516_v63  ;;  %v1521_v53 = vadd.f32 1.0, %v2329_v47 }
 0x8a2   :  { %v1524_v42 = vmul.f32 %v2327_v38, %v1513_v34 }
 0x8a3   :  { %v1523_v31 = vmul.f32 %v1517_v5, %v2858_v20  ;;  %v1522_v54 = vmul.f32 0.5, %v1521_v53 }
 0x8a5   :  { %v1525_v43 = vadd.f32 %v1524_v42, %v1523_v31 }
 0x8a7   :  { %2330 = vtanh.f32 %v1525_v43 }
 0x8b1   :  { %v2331_v13 = vpop.eup %2330 }
 0x8b2   :  { %v1527_v55 = vmul.f32 %v2331_v13, %v1522_v54 }
 0x8b4   :  { %1702 = vmatmul.mubr.f32.vlgmr.msra.gmra.mrb[16].mxu1 %v1527_v55 }
 0x904   :  { %v1506_v59 = vpop.permute.xlu1 %1505 }
 0x905   :  { %1509 = vst.msk [vmem:[#allocation5] sm:$0xff] %vm1508_vm8, %v1506_v59 }
 0x987   :  { %v1617_v3 = vpop.f32.mrb[16].mxu1 }
 0x988   :  { %v1618_v4 = vadd.f32 %v1644_v2, %v1617_v3  ;;  %v1703_v10 = vpop.f32.mrb[17].mxu1 }
 0x98a   :  { %1622 = vrot.lane.b32.xlu0 %v1618_v4, %s2386_s19 }
 0x9fc   :  { %v1623_v19 = vpop.permute.xlu0 %1622 }
 0x9fd   :  { %1626 = vst.msk [vmem:[#allocation5] sm:$0xff] %vm1625_vm9, %v1623_v19 }
 0x9fe   :  { %2365 = shalt.err (!%p2362_p12)
}
 0x9ff   :  { %s2366_s10 = scalar_lea.hbm %s2939_s7, 128 }
 0xa00   :  { %p2367_p13 = scmp.ne.s32.totalorder %s2939_s7, %s2366_s10  ;;  %p2370_p0 = scmp.lt.u32.totalorder %s2366_s10, %s2939_s7 }
 0xa02   :  { %p2372_p1 = pnand %p2370_p0, %p2367_p13 }
 0xa04   :  { %2375 = shalt.err (!%p2372_p1)
}
 0xa05   :  { %1636 = dma.vmem_to_hbm [thread:$0]  %s1634_s30, 128, %s2939_s7, [#allocation4]  }
 0xa06   :  { %2378 = dma.done.wait [#allocation4], 128  }
 0xa07   :  { %2379 = vsyncadd [#allocation4], 4294967168 }
 0xa08   :  { %1640 = vsyncpa [#allocation3], 1 }
 0xa09   :  { %1641 = vsyncpa [#allocation4], 1 }

</bundles_post_ra>
